<compile_context>
chip_gen: v7x
topology: tpu7x:2x2x1
jax: 0.10.0
libtpu: 0.0.40
codegen_flags: <defaults>
</compile_context>

<pallas_src>
import jax
import jax.numpy as jnp
import numpy as np
from jax import lax
from jax.experimental import pallas as pl
from jax.experimental.pallas import tpu as pltpu

# ---- PillarFeatureNet default config ---------------------------------------
IN_CHANNELS = 4                       # x, y, z, reflectance
FEAT_CHANNELS = 64                    # single PFNLayer, last_layer=True
VOXEL_SIZE = (0.2, 0.2, 4.0)
PC_RANGE = (0.0, -40.0, -3.0, 70.4, 40.0, 1.0)
BN_EPS = 1e-3
VX, VY = float(VOXEL_SIZE[0]), float(VOXEL_SIZE[1])
X_OFFSET = VX / 2.0 + PC_RANGE[0]
Y_OFFSET = VY / 2.0 + PC_RANGE[1]
AUG_CHANNELS = IN_CHANNELS + 3 + 2    # = 9  (raw + cluster-center + voxel-center)

LANES = 128                           # slab lane width (full vreg lane axis)


def _make_pfn_kernel(m, c, f, lanes, chunk):
    """Builds the kernel for one grid step over a tile of TP pillars.

    slab_ref : (TP, 128)        lanes 0:m*c = raw points (row-major),
                                lane m*c = num_points, +1 = 1/max(n,1),
                                +2 = voxel_center_x, +3 = voxel_center_y
    w_ref    : (136, m*f+2f)    rows 0:128 = packed matmul weight,
                                row 128, cols 0:f = BN shift
    out_ref  : (TP, f)          pillar features after ReLU + max over points
    """
    mf = m * f

    def kernel(slab_ref, w_ref, out_ref):
        tp = slab_ref.shape[0]
        n_chunks = tp // chunk

        shift = w_ref[lanes:lanes + 1, 0:f]                       # (1, f)
        relu_shift = jnp.maximum(shift, 0.0)                      # (1, f)

        def body(ci, carry):
            off = pl.multiple_of(ci * chunk, chunk)
            x = slab_ref[pl.ds(off, chunk), :]                    # (chunk, 128)

            # One MXU matmul per chunk: per-point terms + both bias groups.
            z = jnp.dot(x, w_ref[0:lanes, :],
                        preferred_element_type=jnp.float32)       # (chunk, mf+2f)

            npts = x[:, m * c:m * c + 1]                          # (chunk, 1)
            inv_n = x[:, m * c + 1:m * c + 2]                     # (chunk, 1)

            # bias = BN_shift - mean3 @ W_mean - vxc*w_vcx - vyc*w_vcy
            bias = (shift
                    - z[:, mf:mf + f] * inv_n
                    - z[:, mf + f:mf + 2 * f])                    # (chunk, f)

            # Mask lane-groups of padded points (point_idx >= num_points).
            lane_id = lax.broadcasted_iota(
                jnp.int32, (chunk, mf), 1).astype(jnp.float32)
            zp = jnp.where(lane_id < npts * float(f),
                           z[:, :mf], -jnp.inf)                   # (chunk, mf)

            # Log-tree lane-group max: mf -> 2f lanes, then fold 2f -> f with
            # a single lane roll (VPU/XLU, no cross-sublane reduction).
            width = mf
            while width > 2 * f:
                half = width // 2
                zp = jnp.maximum(zp[:, :half], zp[:, half:width])
                width = half
            pooled = jnp.maximum(zp, pltpu.roll(zp, shift=f, axis=1))[:, :f]

            # Valid points contribute relu(z + bias); padded points contribute
            # relu(shift) (their augmented features are zeroed before Linear).
            res = jnp.maximum(pooled + bias, 0.0)                 # (chunk, f)
            pad_floor = jnp.where(npts < float(m), relu_shift, 0.0)
            out_ref[pl.ds(off, chunk), :] = jnp.maximum(res, pad_floor)
            return carry

        lax.fori_loop(0, n_chunks, body, 0)

    return kernel


def pillar_feature_net_pallas(features, num_points, coors, w, bn_scale, bn_shift,
                              *, tile_pillars=2048, chunk=128):
    """features: (P, M, 4) f32, num_points: (P,) i32, coors: (P, 4) i32.

    w        : (9, F)  PFN Linear weight (transposed, no bias)
    bn_scale : (F,) or (1, F)  gamma / sqrt(var + eps)
    bn_shift : (F,) or (1, F)  beta - mean * scale
    """
    p, m, c = features.shape
    f = w.shape[1]
    assert c == IN_CHANNELS and w.shape[0] == AUG_CHANNELS
    assert (m & (m - 1)) == 0 and m >= 2, "M must be a power of two"
    assert (m * f) % 128 == 0 and f <= 128
    assert m * c + 4 <= LANES
    assert chunk % 8 == 0

    mf = m * f
    n_cols = mf + 2 * f                                           # 1152

    # ---- fold BN scale + legacy channel duplication into the weights --------
    scale = jnp.reshape(bn_scale, (1, f)).astype(jnp.float32)
    shift = jnp.reshape(bn_shift, (1, f)).astype(jnp.float32)
    ws = w.astype(jnp.float32) * scale                            # (9, F)
    # aug order: [xc, yc, z, r, cl_x, cl_y, cl_z, xc, yc]
    w_main = jnp.stack([ws[0] + ws[4] + ws[7],                    # coeff of x
                        ws[1] + ws[5] + ws[8],                    # coeff of y
                        ws[2] + ws[6],                            # coeff of z
                        ws[3]], axis=0)                           # coeff of r
    w_mean = jnp.concatenate([ws[4:7], jnp.zeros((1, f), jnp.float32)], axis=0)
    w_vcx = (ws[0] + ws[7])[None, :]                              # (1, F)
    w_vcy = (ws[1] + ws[8])[None, :]                              # (1, F)

    # ---- packed matmul weight (128 input lanes -> mf + 2f output columns) ---
    eye_m = jnp.eye(m, dtype=jnp.float32)
    # block-diagonal per-point weight: row 4i+j, cols f*i:f*(i+1) = w_main[j]
    w_bd = (eye_m[:, None, :, None] * w_main[None, :, None, :]).reshape(m * c, mf)
    # "sum over points" cluster-mean weight: same rows feed the mean columns
    w_sum = jnp.tile(w_mean, (m, 1))                              # (m*c, f)
    top = jnp.concatenate(
        [w_bd, w_sum, jnp.zeros((m * c, f), jnp.float32)], axis=1)      # (64, n_cols)
    meta_rows = jnp.zeros((LANES - m * c, n_cols), jnp.float32)
    meta_rows = meta_rows.at[2, mf + f:].set(w_vcx[0])            # vxc lane (66)
    meta_rows = meta_rows.at[3, mf + f:].set(w_vcy[0])            # vyc lane (67)
    shift_rows = jnp.zeros((8, n_cols), jnp.float32).at[0, :f].set(shift[0])
    wpack = jnp.concatenate([top, meta_rows, shift_rows], axis=0)  # (136, n_cols)

    # ---- lane-dense (P, 128) input slab: raw points + per-pillar meta -------
    npts_f = num_points.astype(jnp.float32)[:, None]              # (P, 1)
    inv_n = 1.0 / jnp.maximum(npts_f, 1.0)                        # exact, n small
    vxc = coors[:, 3].astype(jnp.float32)[:, None] * VX + X_OFFSET
    vyc = coors[:, 2].astype(jnp.float32)[:, None] * VY + Y_OFFSET
    feat_flat = features.astype(jnp.float32).reshape(p, m * c)    # (P, 64)
    slab = jnp.concatenate(
        [feat_flat, npts_f, inv_n, vxc, vyc,
         jnp.zeros((p, LANES - m * c - 4), jnp.float32)], axis=1)  # (P, 128)

    # ---- tiling: big tiles, inner chunking; pad pillar axis to a full grid --
    tp = int(min(tile_pillars, pl.cdiv(p, chunk) * chunk))
    tp = max(chunk, (tp // chunk) * chunk)
    p_pad = pl.cdiv(p, tp) * tp
    if p_pad != p:
        slab = jnp.pad(slab, ((0, p_pad - p), (0, 0)))            # zero rows -> finite out

    kernel = _make_pfn_kernel(m, c, f, LANES, chunk)

    out = pl.pallas_call(
        kernel,
        out_shape=jax.ShapeDtypeStruct((p_pad, f), jnp.float32),
        grid_spec=pltpu.PrefetchScalarGridSpec(
            num_scalar_prefetch=0,
            grid=(p_pad // tp,),
            in_specs=[
                pl.BlockSpec((tp, LANES), lambda i: (i, 0)),
                pl.BlockSpec((LANES + 8, n_cols), lambda i: (0, 0)),  # resident
            ],
            out_specs=pl.BlockSpec((tp, f), lambda i: (i, 0)),
        ),
        compiler_params=pltpu.CompilerParams(
            dimension_semantics=("parallel",)),
    )(slab, wpack)
    return out[:p]


def pillar_feature_net_ref(features, num_points, coors, w, bn_scale, bn_shift):
    """Pure-JAX reference mirroring the PyTorch forward (legacy=True, eval BN)."""
    npf = num_points.astype(features.dtype)
    xyz = features[:, :, :3]
    points_mean = xyz.sum(axis=1, keepdims=True) / npf[:, None, None]
    f_cluster = xyz - points_mean
    cx = coors[:, 3].astype(features.dtype)[:, None]
    cy = coors[:, 2].astype(features.dtype)[:, None]
    xc = features[:, :, 0] - (cx * VX + X_OFFSET)
    yc = features[:, :, 1] - (cy * VY + Y_OFFSET)
    f_center = jnp.stack([xc, yc], axis=-1)
    feats = jnp.concatenate(
        [f_center, features[:, :, 2:], f_cluster, f_center], axis=-1)
    m = features.shape[1]
    mask = (jnp.arange(m)[None, :] < num_points[:, None]).astype(features.dtype)
    feats = feats * mask[:, :, None]
    x = jnp.einsum('pmc,cf->pmf', feats, w, precision=lax.Precision.HIGHEST)
    x = x * jnp.reshape(bn_scale, (1, 1, -1)) + jnp.reshape(bn_shift, (1, 1, -1))
    x = jnp.maximum(x, 0.0)
    return jnp.max(x, axis=1)


if __name__ == "__main__":
    P, M, C, F = 512, 16, IN_CHANNELS, FEAT_CHANNELS

    key = jax.random.PRNGKey(0)
    (k1, k2, k3, k4, k5, k6, k7,
     kw, kg, kb, km, kv) = jax.random.split(key, 12)

    # Synthetic points inside the point-cloud range.
    pts_x = jax.random.uniform(k1, (P, M, 1), minval=PC_RANGE[0], maxval=PC_RANGE[3])
    pts_y = jax.random.uniform(k2, (P, M, 1), minval=PC_RANGE[1], maxval=PC_RANGE[4])
    pts_z = jax.random.uniform(k3, (P, M, 1), minval=PC_RANGE[2], maxval=PC_RANGE[5])
    pts_r = jax.random.uniform(k4, (P, M, 1), minval=0.0, maxval=1.0)
    features = jnp.concatenate([pts_x, pts_y, pts_z, pts_r], axis=-1).astype(jnp.float32)

    num_points = jax.random.randint(k5, (P,), 1, M + 1).astype(jnp.int32)
    valid = (jnp.arange(M)[None, :] < num_points[:, None])[:, :, None]
    features = features * valid           # padded rows are zero (as a voxelizer emits)

    nx = int(round((PC_RANGE[3] - PC_RANGE[0]) / VX))
    ny = int(round((PC_RANGE[4] - PC_RANGE[1]) / VY))
    coor_x = jax.random.randint(k6, (P, 1), 0, nx)
    coor_y = jax.random.randint(k7, (P, 1), 0, ny)
    zeros = jnp.zeros((P, 1), jnp.int32)
    coors = jnp.concatenate(
        [zeros, zeros, coor_y.astype(jnp.int32), coor_x.astype(jnp.int32)], axis=-1)

    # Deterministic synthetic parameters (PFN Linear weight + eval-mode BN fold).
    bound = 1.0 / np.sqrt(AUG_CHANNELS)
    w = jax.random.uniform(kw, (AUG_CHANNELS, F), minval=-bound, maxval=bound,
                           dtype=jnp.float32)
    gamma = 1.0 + 0.1 * jax.random.normal(kg, (F,), dtype=jnp.float32)
    beta = 0.1 * jax.random.normal(kb, (F,), dtype=jnp.float32)
    run_mean = 0.1 * jax.random.normal(km, (F,), dtype=jnp.float32)
    run_var = 1.0 + 0.1 * jnp.abs(jax.random.normal(kv, (F,), dtype=jnp.float32))
    bn_scale = (gamma / jnp.sqrt(run_var + BN_EPS)).reshape(1, F)
    bn_shift = (beta - run_mean * gamma / jnp.sqrt(run_var + BN_EPS)).reshape(1, F)

    out = pillar_feature_net_pallas(features, num_points, coors, w, bn_scale, bn_shift)
    out = jax.block_until_ready(out)

    ref = pillar_feature_net_ref(features, num_points, coors, w, bn_scale, bn_shift)
    # Exact host-side 1/n + f32 MXU matmuls allow a much tighter tolerance than
    # before; remaining slack covers the host-side weight folding (reassociated
    # f32 sums) vs. the unfolded reference.
    np.testing.assert_allclose(np.asarray(out), np.asarray(ref), rtol=1e-3, atol=5e-3)

    print("KERNEL_OK")
</pallas_src>

<mosaic_0001>
module attributes {stable_mosaic.version = 11 : i64} {
  func.func @kernel(%arg0: i32, %arg1: memref<512x128xf32, #tpu.memory_space<vmem>>, %arg2: memref<136x1152xf32, #tpu.memory_space<vmem>>, %arg3: memref<512x64xf32, #tpu.memory_space<vmem>>) attributes {dimension_semantics = [#tpu.dimension_semantics<parallel>], iteration_bounds = array<i64: 1>, scalar_prefetch = 0 : i64, scratch_operands = 0 : i64, tpu.core_type = #tpu.core_type<tc>, window_params = [{transform_indices = @transform_0, window_bounds = array<i64: 512, 128>}, {pipeline_mode = #tpu.pipeline_mode<synchronous>, transform_indices = @transform_1, window_bounds = array<i64: 136, 1152>}, {transform_indices = @transform_2, window_bounds = array<i64: 512, 64>}]} {
    %c128 = arith.constant 128 : index
    %c0 = arith.constant 0 : index
    %0 = vector.load %arg2[%c128, %c0] : memref<136x1152xf32, #tpu.memory_space<vmem>>, vector<1x64xf32>
    %cst = arith.constant 0.000000e+00 : f32
    %1 = vector.broadcast %cst : f32 to vector<1x64xf32>
    %2 = arith.maximumf %0, %1 : vector<1x64xf32>
    %c0_i32 = arith.constant 0 : i32
    %c4_i32 = arith.constant 4 : i32
    %3 = arith.addi %c0_i32, %c4_i32 : i32
    %c1_i32 = arith.constant 1 : i32
    scf.for %arg4 = %c0_i32 to %3 step %c1_i32  : i32 {
      %c128_i32 = arith.constant 128 : i32
      %4 = arith.muli %arg4, %c128_i32 : i32
      %5 = tpu.assume_multiple %4, 128 : i32
      %6 = arith.index_cast %5 : i32 to index
      %c0_1 = arith.constant 0 : index
      %7 = vector.load %arg1[%6, %c0_1] : memref<512x128xf32, #tpu.memory_space<vmem>>, vector<128x128xf32>
      %c0_2 = arith.constant 0 : index
      %c0_3 = arith.constant 0 : index
      %8 = vector.load %arg2[%c0_2, %c0_3] : memref<136x1152xf32, #tpu.memory_space<vmem>>, vector<128x1152xf32>
      %cst_4 = arith.constant dense<0.000000e+00> : vector<128x1152xf32>
      %9 = tpu.matmul %7, %8, %cst_4 {dimension_numbers = #tpu.dot_dimension_numbers<[1], [0], [0], [1], [0, 0, 1, 1], [], []>} : vector<128x128xf32>, vector<128x1152xf32>, vector<128x1152xf32> -> vector<128x1152xf32>
      %10 = vector.extract_strided_slice %7 {offsets = [0, 64], sizes = [128, 1], strides = [1, 1]} : vector<128x128xf32> to vector<128x1xf32>
      %11 = vector.extract_strided_slice %7 {offsets = [0, 65], sizes = [128, 1], strides = [1, 1]} : vector<128x128xf32> to vector<128x1xf32>
      %12 = vector.extract_strided_slice %9 {offsets = [0, 1024], sizes = [128, 64], strides = [1, 1]} : vector<128x1152xf32> to vector<128x64xf32>
      %13 = vector.broadcast %11 : vector<128x1xf32> to vector<128x64xf32>
      %14 = arith.mulf %12, %13 : vector<128x64xf32>
      %15 = vector.broadcast %0 : vector<1x64xf32> to vector<128x64xf32>
      %16 = arith.subf %15, %14 : vector<128x64xf32>
      %17 = vector.extract_strided_slice %9 {offsets = [0, 1088], sizes = [128, 64], strides = [1, 1]} : vector<128x1152xf32> to vector<128x64xf32>
      %18 = arith.subf %16, %17 : vector<128x64xf32>
      %19 = tpu.iota {dimensions = array<i32: 1>} : vector<128x1024xi32>
      %20 = arith.sitofp %19 : vector<128x1024xi32> to vector<128x1024xf32>
      %cst_5 = arith.constant 6.400000e+01 : f32
      %21 = vector.broadcast %cst_5 : f32 to vector<128x1xf32>
      %22 = arith.mulf %10, %21 : vector<128x1xf32>
      %23 = vector.broadcast %22 : vector<128x1xf32> to vector<128x1024xf32>
      %24 = arith.cmpf olt, %20, %23 : vector<128x1024xf32>
      %25 = vector.extract_strided_slice %9 {offsets = [0, 0], sizes = [128, 1024], strides = [1, 1]} : vector<128x1152xf32> to vector<128x1024xf32>
      %cst_6 = arith.constant 0xFF800000 : f32
      %26 = vector.broadcast %cst_6 : f32 to vector<128x1024xf32>
      %27 = arith.select %24, %25, %26 : vector<128x1024xi1>, vector<128x1024xf32>
      %28 = vector.extract_strided_slice %27 {offsets = [0, 0], sizes = [128, 512], strides = [1, 1]} : vector<128x1024xf32> to vector<128x512xf32>
      %29 = vector.extract_strided_slice %27 {offsets = [0, 512], sizes = [128, 512], strides = [1, 1]} : vector<128x1024xf32> to vector<128x512xf32>
      %30 = arith.maximumf %28, %29 : vector<128x512xf32>
      %31 = vector.extract_strided_slice %30 {offsets = [0, 0], sizes = [128, 256], strides = [1, 1]} : vector<128x512xf32> to vector<128x256xf32>
      %32 = vector.extract_strided_slice %30 {offsets = [0, 256], sizes = [128, 256], strides = [1, 1]} : vector<128x512xf32> to vector<128x256xf32>
      %33 = arith.maximumf %31, %32 : vector<128x256xf32>
      %34 = vector.extract_strided_slice %33 {offsets = [0, 0], sizes = [128, 128], strides = [1, 1]} : vector<128x256xf32> to vector<128x128xf32>
      %35 = vector.extract_strided_slice %33 {offsets = [0, 128], sizes = [128, 128], strides = [1, 1]} : vector<128x256xf32> to vector<128x128xf32>
      %36 = arith.maximumf %34, %35 : vector<128x128xf32>
      %c64_i32 = arith.constant 64 : i32
      %37 = tpu.dynamic_rotate %36 by %c64_i32 dim 1 : vector<128x128xf32>, i32 -> vector<128x128xf32>
      %38 = arith.maximumf %36, %37 : vector<128x128xf32>
      %39 = vector.extract_strided_slice %38 {offsets = [0, 0], sizes = [128, 64], strides = [1, 1]} : vector<128x128xf32> to vector<128x64xf32>
      %40 = arith.addf %39, %18 : vector<128x64xf32>
      %cst_7 = arith.constant 0.000000e+00 : f32
      %41 = vector.broadcast %cst_7 : f32 to vector<128x64xf32>
      %42 = arith.maximumf %40, %41 : vector<128x64xf32>
      %cst_8 = arith.constant 1.600000e+01 : f32
      %43 = vector.broadcast %cst_8 : f32 to vector<128x1xf32>
      %44 = arith.cmpf olt, %10, %43 : vector<128x1xf32>
      %cst_9 = arith.constant 0.000000e+00 : f32
      %45 = vector.shape_cast %44 : vector<128x1xi1> to vector<128x1xi1>
      %46 = vector.broadcast %45 : vector<128x1xi1> to vector<128x64xi1>
      %47 = vector.shape_cast %2 : vector<1x64xf32> to vector<1x64xf32>
      %48 = vector.broadcast %47 : vector<1x64xf32> to vector<128x64xf32>
      %49 = vector.broadcast %cst_9 : f32 to vector<128x64xf32>
      %50 = arith.select %46, %48, %49 : vector<128x64xi1>, vector<128x64xf32>
      %51 = arith.maximumf %42, %50 : vector<128x64xf32>
      %52 = arith.index_cast %5 : i32 to index
      %c0_10 = arith.constant 0 : index
      %53 = vector.load %arg3[%52, %c0_10] : memref<512x64xf32, #tpu.memory_space<vmem>>, vector<128x64xf32>
      tpu.vector_store %arg3[%52, %c0_10], %51 {strides = array<i32>} : memref<512x64xf32, #tpu.memory_space<vmem>>, vector<128x64xf32>,
    }
    %c4_i32_0 = arith.constant 4 : i32
    return
  }
  func.func @transform_0(%arg0: i32) -> (i32, i32) {
    %c0_i32 = arith.constant 0 : i32
    %c0_i32_0 = arith.constant 0 : i32
    return %arg0, %c0_i32 : i32, i32
  }
  func.func @transform_1(%arg0: i32) -> (i32, i32) {
    %c0_i32 = arith.constant 0 : i32
    %c0_i32_0 = arith.constant 0 : i32
    %c0_i32_1 = arith.constant 0 : i32
    return %c0_i32, %c0_i32_0 : i32, i32
  }
  func.func @transform_2(%arg0: i32) -> (i32, i32) {
    %c0_i32 = arith.constant 0 : i32
    %c0_i32_0 = arith.constant 0 : i32
    return %arg0, %c0_i32 : i32, i32
  }
}

</mosaic_0001>

<bundles_post_ra>
// kernel: tpu_custom_call.1
= control target key start
LH: loop header
LB: loop body
LE: loop exit
PB: predicated region body
PF: predicated region fallthrough
CT: control target
= control target key end

     0   :  { %7 = vsyncpa [#allocation3], 0  ;;  %s3778_s0 = inlined_call_operand.hbm [shape: f32[512,128], index: 0, kind: input, shape index: {}]   ;;  %s3779_s1 = inlined_call_operand.hbm [shape: f32[136,1152], index: 1, kind: input, shape index: {}]   ;;  %s3780_s2 = inlined_call_operand.vmem [shape: f32[512,64], index: 2, kind: output, shape index: {}]  }
   0x1   :  { %8 = vsyncpa [#allocation5], 0  ;;  %s2256_s9 = smov [#allocation2]   ;;  %s2200_s13 = scalar_lea.hbm %s3778_s0, 8192 }
   0x2   :  { %s14_s10 = sshll.u32 %s2256_s9, 4  ;;  %p2201_p0 = scmp.ne.s32.totalorder %s3778_s0, %s2200_s13  ;;  %s15_s10 = int_to_ptr.vmem [resolvable:$true] %s14_s10 }
   0x3   :  { %p2204_p1 = scmp.lt.u32.totalorder %s2200_s13, %s3778_s0 }
   0x5   :  { %p2206_p2 = pnand %p2204_p1, %p2201_p0 }
   0x7   :  { %2209 = shalt.err (!%p2206_p2)
}
   0x8   :  { %s2210_s18 = scalar_lea.vmem %s15_s10, 8192  ;;  %p2215_p4 = scmp.lt.s32.totalorder %s15_s10, %s15_s10 }
   0x9   :  { %p2211_p3 = scmp.ne.s32.totalorder %s15_s10, %s2210_s18  ;;  %p2216_p5 = scmp.lt.s32.totalorder %s2210_s18, %s2210_s18 }
   0xb   :  { %p2217_p6 = por %p2216_p5, %p2215_p4 }
   0xd   :  { %p2218_p7 = pnand %p2217_p6, %p2211_p3 }
   0xf   :  { %2221 = shalt.err (!%p2218_p7)
}
  0x10   :  { %s2257_s19 = smov 128   ;;  %s2258_s20 = smov 8  }
  0x11   :  { %20 = dma.hbm_to_vmem [thread:$0]  %s3778_s0, 8192, %s15_s10, [#allocation3], %s2257_s19, %s2257_s19, %s2258_s20  }
  0x12   :  { %s2259_s23 = smov [#allocation4]   ;;  %s2222_s27 = scalar_lea.hbm %s3779_s1, 19584 }
  0x13   :  { %s26_s24 = sshll.u32 %s2259_s23, 4  ;;  %p2223_p8 = scmp.ne.s32.totalorder %s3779_s1, %s2222_s27  ;;  %s27_s24 = int_to_ptr.vmem [resolvable:$true] %s26_s24 }
  0x14   :  { %p2226_p9 = scmp.lt.u32.totalorder %s2222_s27, %s3779_s1 }
  0x16   :  { %p2228_p10 = pnand %p2226_p9, %p2223_p8 }
  0x18   :  { %2231 = shalt.err (!%p2228_p10)
}
  0x19   :  { %s2232_s4 = scalar_lea.vmem %s27_s24, 19584  ;;  %p2237_p12 = scmp.lt.s32.totalorder %s27_s24, %s27_s24 }
  0x1a   :  { %p2233_p11 = scmp.ne.s32.totalorder %s27_s24, %s2232_s4  ;;  %p2238_p13 = scmp.lt.s32.totalorder %s2232_s4, %s2232_s4 }
  0x1c   :  { %p2239_p0 = por %p2238_p13, %p2237_p12 }
  0x1e   :  { %p2240_p1 = pnand %p2239_p0, %p2233_p11 }
  0x20   :  { %2243 = shalt.err (!%p2240_p1)
}
  0x21   :  { %s2260_s0 = smov 1152   ;;  %s2261_s5 = smov 72  }
  0x22   :  { %32 = dma.hbm_to_vmem [thread:$0]  %s3779_s1, 19584, %s27_s24, [#allocation5], %s2260_s0, %s2260_s0, %s2261_s5  }
  0x23   :  { %2248 = dma.done.wait [#allocation3], 8192  }
  0x24   :  { %2249 = vsyncadd [#allocation3], 4294959104 }
  0x25   :  { %2250 = dma.done.wait [#allocation5], 19584  }
  0x26   :  { %2251 = vsyncadd [#allocation5], 4294947712  ;;  %v2306_v0 = vld [vmem:[#allocation4 + $0x480] ss:$0 sm:$0xff]  ;;  %s2311_s8 = smov 0  }
  0x27   :  { %3797 = vst [vmem:[#allocation8_spill] sm:$0xff] %v2306_v0  ;;  %v2309_v1 = vmax.f32 %v2306_v0, 0.0 }
  0x29   :  { %3798 = vst [vmem:[#allocation9_spill] sm:$0xff] %v2309_v1 }
  0x2a LB: > { %v66_v2 = vld [vmem:[#allocation4 + $0x8] sm:$0xff]  ;;  %v75_v3 = vld [vmem:[#allocation4 + $0x50] sm:$0xff]  ;;  %v68_v4 = vld [vmem:[#allocation4 + $0x18] sm:$0xff]  ;;  %v2262_v9 = vmov 0.0   ;;  %v2263_v15 = vmov 65   ;;  %s1912_s1 = sshll.u32 %s2254_s8, 7  ;;  %s2254_s8 = sphi %s2311_s8, %s46_s8  }
  0x2b   : > { %v2001_v5 = vpack.c.bf16 %v75_v3, %v66_v2  ;;  %v77_v6 = vld [vmem:[#allocation4 + $0x60] sm:$0xff]  ;;  %v74_v8 = vld [vmem:[#allocation4 + $0x48] sm:$0xff]  ;;  %273 = vmatprep.mubr.f32.mxu0 %v2262_v9  ;;  %434 = vmatprep.mubr.f32.mxu1 %v2262_v9  ;;  %v67_v12 = vld [vmem:[#allocation4 + $0x10] sm:$0xff]  ;;  %s2321_s9 = scalar_lea.vmem [#allocation2], %s1912_s1  ;;  %s2266_s10 = smov 64  }
  0x2c   : > { %v65_v7 = vld [vmem:[#allocation4] sm:$0xff]  ;;  %v2033_v10 = vpack.c.bf16 %v77_v6, %v68_v4  ;;  %v76_v13 = vld [vmem:[#allocation4 + $0x58] sm:$0xff]  ;;  %2196 = vset.pattern.permute.xlu0 %v2263_v15  ;;  %2197 = vset.pattern.permute.xlu1 %v2263_v15  ;;  %v86_v18 = vld [vmem:[#allocation4 + $0xa8] sm:$0xff]  ;;  %s3647_s13 = scalar_lea.vmem %s3780_s2, %s1912_s1  ;;  %s46_s8 = sadd.s32 1, %s2254_s8  }
  0x2d   : > { %v2003_v11 = vpack.c.bf16 %v74_v8, %v65_v7  ;;  %v84_v14 = vld [vmem:[#allocation4 + $0x98] sm:$0xff]  ;;  %2002 = vmatprep.subr.bf16.mxu0 %v2001_v5  ;;  %v2035_v16 = vpack.c.bf16 %v76_v13, %v67_v12  ;;  %v93_v17 = vld [vmem:[#allocation4 + $0xe0] sm:$0xff]  ;;  %v95_v19 = vld [vmem:[#allocation4 + $0xf0] sm:$0xff]  ;;  %p43_p2 = scmp.ge.s32.totalorder %s46_s8, 4  }
  0x2e   : > { %2034 = vmatprep.subr.bf16.mxu1 %v2033_v10  ;;  %v2005_v20 = vpack.c.bf16 %v93_v17, %v84_v14  ;;  %v2037_v21 = vpack.c.bf16 %v95_v19, %v86_v18  ;;  %v83_v22 = vld [vmem:[#allocation4 + $0x90] sm:$0xff]  ;;  %v92_v23 = vld [vmem:[#allocation4 + $0xd8] sm:$0xff]  ;;  %v85_v24 = vld [vmem:[#allocation4 + $0xa0] sm:$0xff] }
  0x2f   : > { %2004 = vmatpush1.bf16.msra.mxu0 %v2003_v11  ;;  %2036 = vmatpush1.bf16.msra.mxu1 %v2035_v16  ;;  %v2007_v25 = vpack.c.bf16 %v92_v23, %v83_v22  ;;  %v94_v26 = vld [vmem:[#allocation4 + $0xe8] sm:$0xff]  ;;  %v111_v28 = vld [vmem:[#allocation4 + $0x170] sm:$0xff]  ;;  %v104_v31 = vld [vmem:[#allocation4 + $0x138] sm:$0xff] }
  0x30   : > { %v102_v27 = vld [vmem:[#allocation4 + $0x128] sm:$0xff]  ;;  %2006 = vmatprep.subr.bf16.mxu0 %v2005_v20  ;;  %2038 = vmatprep.subr.bf16.mxu1 %v2037_v21  ;;  %v2039_v29 = vpack.c.bf16 %v94_v26, %v85_v24  ;;  %v113_v32 = vld [vmem:[#allocation4 + $0x180] sm:$0xff]  ;;  %v103_v36 = vld [vmem:[#allocation4 + $0x130] sm:$0xff] }
  0x31   : > { %v2009_v30 = vpack.c.bf16 %v111_v28, %v102_v27  ;;  %v101_v33 = vld [vmem:[#allocation4 + $0x120] sm:$0xff]  ;;  %v2041_v34 = vpack.c.bf16 %v113_v32, %v104_v31  ;;  %v110_v35 = vld [vmem:[#allocation4 + $0x168] sm:$0xff]  ;;  %v112_v37 = vld [vmem:[#allocation4 + $0x178] sm:$0xff] }
  0x32   : > { %v2011_v38 = vpack.c.bf16 %v110_v35, %v101_v33  ;;  %v120_v39 = vld [vmem:[#allocation4 + $0x1b8] sm:$0xff]  ;;  %v129_v40 = vld [vmem:[#allocation4 + $0x200] sm:$0xff]  ;;  %v122_v41 = vld [vmem:[#allocation4 + $0x1c8] sm:$0xff]  ;;  %v2043_v42 = vpack.c.bf16 %v112_v37, %v103_v36 }
  0x33   : > { %2008 = vmatpush1.bf16.msra.mxu0 %v2007_v25  ;;  %2040 = vmatpush1.bf16.msra.mxu1 %v2039_v29  ;;  %v2013_v43 = vpack.c.bf16 %v129_v40, %v120_v39  ;;  %v131_v44 = vld [vmem:[#allocation4 + $0x210] sm:$0xff]  ;;  %v128_v46 = vld [vmem:[#allocation4 + $0x1f8] sm:$0xff]  ;;  %v121_v48 = vld [vmem:[#allocation4 + $0x1c0] sm:$0xff] }
  0x34   : > { %2010 = vmatprep.subr.bf16.mxu0 %v2009_v30  ;;  %v119_v45 = vld [vmem:[#allocation4 + $0x1b0] sm:$0xff]  ;;  %2042 = vmatprep.subr.bf16.mxu1 %v2041_v34  ;;  %v2045_v47 = vpack.c.bf16 %v131_v44, %v122_v41  ;;  %v130_v49 = vld [vmem:[#allocation4 + $0x208] sm:$0xff]  ;;  %v140_v52 = vld [vmem:[#allocation4 + $0x258] sm:$0xff] }
  0x35   : > { %v138_v50 = vld [vmem:[#allocation4 + $0x248] sm:$0xff]  ;;  %v147_v51 = vld [vmem:[#allocation4 + $0x290] sm:$0xff]  ;;  %v149_v53 = vld [vmem:[#allocation4 + $0x2a0] sm:$0xff]  ;;  %v2015_v54 = vpack.c.bf16 %v128_v46, %v119_v45  ;;  %v2047_v55 = vpack.c.bf16 %v130_v49, %v121_v48 }
  0x36   : > { %v2017_v56 = vpack.c.bf16 %v147_v51, %v138_v50  ;;  %v137_v57 = vld [vmem:[#allocation4 + $0x240] sm:$0xff]  ;;  %v146_v58 = vld [vmem:[#allocation4 + $0x288] sm:$0xff]  ;;  %v139_v59 = vld [vmem:[#allocation4 + $0x250] sm:$0xff]  ;;  %v2049_v60 = vpack.c.bf16 %v149_v53, %v140_v52 }
  0x37   : > { %2012 = vmatpush1.bf16.msra.mxu0 %v2011_v38  ;;  %2044 = vmatpush1.bf16.msra.mxu1 %v2043_v42  ;;  %v148_v61 = vld [vmem:[#allocation4 + $0x298] sm:$0xff]  ;;  %v165_v63 = vld [vmem:[#allocation4 + $0x320] sm:$0xff]  ;;  %v158_v2 = vld [vmem:[#allocation4 + $0x2e8] sm:$0xff]  ;;  %v2019_v4 = vpack.c.bf16 %v146_v58, %v137_v57 }
  0x38   : > { %2014 = vmatprep.subr.bf16.mxu0 %v2013_v43  ;;  %2046 = vmatprep.subr.bf16.mxu1 %v2045_v47  ;;  %v156_v62 = vld [vmem:[#allocation4 + $0x2d8] sm:$0xff]  ;;  %v167_v3 = vld [vmem:[#allocation4 + $0x330] sm:$0xff]  ;;  %v2051_v5 = vpack.c.bf16 %v148_v61, %v139_v59  ;;  %v157_v10 = vld [vmem:[#allocation4 + $0x2e0] sm:$0xff] }
  0x39   : > { %v2021_v6 = vpack.c.bf16 %v165_v63, %v156_v62  ;;  %v155_v7 = vld [vmem:[#allocation4 + $0x2d0] sm:$0xff]  ;;  %v164_v8 = vld [vmem:[#allocation4 + $0x318] sm:$0xff]  ;;  %v2053_v11 = vpack.c.bf16 %v167_v3, %v158_v2  ;;  %v166_v12 = vld [vmem:[#allocation4 + $0x328] sm:$0xff] }
  0x3a   : > { %v174_v13 = vld [vmem:[#allocation4 + $0x368] sm:$0xff]  ;;  %v183_v14 = vld [vmem:[#allocation4 + $0x3b0] sm:$0xff]  ;;  %v176_v15 = vld [vmem:[#allocation4 + $0x378] sm:$0xff]  ;;  %v2023_v17 = vpack.c.bf16 %v164_v8, %v155_v7  ;;  %v2055_v19 = vpack.c.bf16 %v166_v12, %v157_v10 }
  0x3b   : > { %2016 = vmatpush1.bf16.msra.mxu0 %v2015_v54  ;;  %2048 = vmatpush1.bf16.msra.mxu1 %v2047_v55  ;;  %v185_v16 = vld [vmem:[#allocation4 + $0x3c0] sm:$0xff]  ;;  %v2025_v20 = vpack.c.bf16 %v183_v14, %v174_v13  ;;  %v182_v21 = vld [vmem:[#allocation4 + $0x3a8] sm:$0xff]  ;;  %v175_v22 = vld [vmem:[#allocation4 + $0x370] sm:$0xff] }
  0x3c   : > { %2018 = vmatprep.subr.bf16.mxu0 %v2017_v56  ;;  %2050 = vmatprep.subr.bf16.mxu1 %v2049_v60  ;;  %v173_v18 = vld [vmem:[#allocation4 + $0x360] sm:$0xff]  ;;  %v2057_v24 = vpack.c.bf16 %v185_v16, %v176_v15  ;;  %v184_v25 = vld [vmem:[#allocation4 + $0x3b8] sm:$0xff]  ;;  %v194_v28 = vld [vmem:[#allocation4 + $0x408] sm:$0xff] }
  0x3d   : > { %v2324_v23 = vld [vmem:[%s2321_s9] sm:$0xff]  ;;  %v192_v26 = vld [vmem:[#allocation4 + $0x3f8] sm:$0xff]  ;;  %v203_v29 = vld [vmem:[#allocation4 + $0x450] sm:$0xff]  ;;  %v2027_v30 = vpack.c.bf16 %v182_v21, %v173_v18  ;;  %v2059_v33 = vpack.c.bf16 %v184_v25, %v175_v22 }
  0x3e   : > { %v201_v27 = vld [vmem:[#allocation4 + $0x440] sm:$0xff]  ;;  %1000 = vperm.xlu0 %2196, %v2324_v23   ;;  %v191_v31 = vld [vmem:[#allocation4 + $0x3f0] sm:$0xff]  ;;  %v200_v32 = vld [vmem:[#allocation4 + $0x438] sm:$0xff]  ;;  %v2061_v38 = vpack.c.bf16 %v203_v29, %v194_v28  ;;  %vm1751_vm0 = vcmp.lt.f32.partialorder %v2324_v23, 16.0 }
  0x3f   : > { %2020 = vmatpush1.bf16.msra.mxu0 %v2019_v4  ;;  %2052 = vmatpush1.bf16.msra.mxu1 %v2051_v5  ;;  %v2029_v34 = vpack.c.bf16 %v201_v27, %v192_v26  ;;  %v193_v35 = vld [vmem:[#allocation4 + $0x400] sm:$0xff]  ;;  %v202_v36 = vld [vmem:[#allocation4 + $0x448] sm:$0xff]  ;;  %v2328_v37 = vld [vmem:[%s2321_s9 + $0x10] sm:$0xff]  ;;  %v2031_v44 = vpack.c.bf16 %v200_v32, %v191_v31 }
  0x40   : > { %2022 = vmatprep.subr.bf16.mxu0 %v2021_v6  ;;  %2054 = vmatprep.subr.bf16.mxu1 %v2053_v11  ;;  %v70_v39 = vld [vmem:[#allocation4 + $0x28] sm:$0xff]  ;;  %v79_v40 = vld [vmem:[#allocation4 + $0x70] sm:$0xff]  ;;  %v72_v42 = vld [vmem:[#allocation4 + $0x38] sm:$0xff]  ;;  %v2063_v45 = vpack.c.bf16 %v202_v36, %v193_v35  ;;  %vm1753_vm2 = vcmp.lt.f32.partialorder %v2328_v37, 16.0 }
  0x41   : > { %v2331_v41 = vld [vmem:[%s2321_s9 + $0x8] sm:$0xff]  ;;  %1010 = vperm.xlu1 %2197, %v2328_v37   ;;  %v81_v43 = vld [vmem:[#allocation4 + $0x80] sm:$0xff]  ;;  %v2065_v46 = vpack.c.bf16 %v79_v40, %v70_v39  ;;  %v2336_v49 = vld [vmem:[%s2321_s9 + $0x18] sm:$0xff] }
  0x42   : > { %1005 = vperm.xlu0 %2196, %v2331_v41   ;;  %v69_v47 = vld [vmem:[#allocation4 + $0x20] sm:$0xff]  ;;  %v78_v48 = vld [vmem:[#allocation4 + $0x68] sm:$0xff]  ;;  %v2097_v50 = vpack.c.bf16 %v81_v43, %v72_v42  ;;  %v71_v51 = vld [vmem:[#allocation4 + $0x30] sm:$0xff]  ;;  %vm1752_vm1 = vcmp.lt.f32.partialorder %v2331_v41, 16.0  ;;  %vm1754_vm3 = vcmp.lt.f32.partialorder %v2336_v49, 16.0 }
  0x43   : > { %2024 = vmatpush1.bf16.msra.mxu0 %v2023_v17  ;;  %2056 = vmatpush1.bf16.msra.mxu1 %v2055_v19  ;;  %v80_v52 = vld [vmem:[#allocation4 + $0x78] sm:$0xff]  ;;  %v2339_v53 = vld [vmem:[%s2321_s9 + $0x20] sm:$0xff]  ;;  %v2067_v56 = vpack.c.bf16 %v78_v48, %v69_v47  ;;  %v90_v57 = vld [vmem:[#allocation4 + $0xc8] sm:$0xff] }
  0x44   : > { %2026 = vmatprep.subr.bf16.mxu0 %v2025_v20  ;;  %2058 = vmatprep.subr.bf16.mxu1 %v2057_v24  ;;  %v88_v54 = vld [vmem:[#allocation4 + $0xb8] sm:$0xff]  ;;  %v97_v55 = vld [vmem:[#allocation4 + $0x100] sm:$0xff]  ;;  %v99_v58 = vld [vmem:[#allocation4 + $0x110] sm:$0xff]  ;;  %v2099_v59 = vpack.c.bf16 %v80_v52, %v71_v51  ;;  %vm1755_vm4 = vcmp.lt.f32.partialorder %v2339_v53, 16.0 }
  0x45   : > { %1015 = vperm.xlu1 %2197, %v2336_v49   ;;  %v87_v60 = vld [vmem:[#allocation4 + $0xb0] sm:$0xff]  ;;  %v2344_v61 = vld [vmem:[%s2321_s9 + $0x28] sm:$0xff]  ;;  %v2069_v62 = vpack.c.bf16 %v97_v55, %v88_v54  ;;  %v96_v63 = vld [vmem:[#allocation4 + $0xf8] sm:$0xff]  ;;  %v2101_v4 = vpack.c.bf16 %v99_v58, %v90_v57 }
  0x46   : > { %1020 = vperm.xlu0 %2196, %v2339_v53   ;;  %v89_v2 = vld [vmem:[#allocation4 + $0xc0] sm:$0xff]  ;;  %v2347_v3 = vld [vmem:[%s2321_s9 + $0x30] sm:$0xff]  ;;  %v98_v5 = vld [vmem:[#allocation4 + $0x108] sm:$0xff]  ;;  %v2071_v11 = vpack.c.bf16 %v96_v63, %v87_v60  ;;  %vm1756_vm5 = vcmp.lt.f32.partialorder %v2344_v61, 16.0 }
  0x47   : > { %2028 = vmatpush1.bf16.msra.mxu0 %v2027_v30  ;;  %2060 = vmatpush1.bf16.msra.mxu1 %v2059_v33  ;;  %v106_v6 = vld [vmem:[#allocation4 + $0x148] sm:$0xff]  ;;  %v115_v7 = vld [vmem:[#allocation4 + $0x190] sm:$0xff]  ;;  %v108_v8 = vld [vmem:[#allocation4 + $0x158] sm:$0xff]  ;;  %v2103_v12 = vpack.c.bf16 %v98_v5, %v89_v2  ;;  %vm1757_vm6 = vcmp.lt.f32.partialorder %v2347_v3, 16.0 }
  0x48   : > { %2030 = vmatprep.subr.bf16.mxu0 %v2029_v34  ;;  %2062 = vmatprep.subr.bf16.mxu1 %v2061_v38  ;;  %v117_v10 = vld [vmem:[#allocation4 + $0x1a0] sm:$0xff]  ;;  %v2073_v13 = vpack.c.bf16 %v115_v7, %v106_v6  ;;  %v114_v15 = vld [vmem:[#allocation4 + $0x188] sm:$0xff]  ;;  %v107_v16 = vld [vmem:[#allocation4 + $0x150] sm:$0xff] }
  0x49   : > { %1025 = vperm.xlu1 %2197, %v2344_v61   ;;  %v105_v14 = vld [vmem:[#allocation4 + $0x140] sm:$0xff]  ;;  %v2105_v17 = vpack.c.bf16 %v117_v10, %v108_v8  ;;  %v116_v18 = vld [vmem:[#allocation4 + $0x198] sm:$0xff]  ;;  %v126_v21 = vld [vmem:[#allocation4 + $0x1e8] sm:$0xff] }
  0x4a   : > { %1030 = vperm.xlu0 %2196, %v2347_v3   ;;  %v124_v19 = vld [vmem:[#allocation4 + $0x1d8] sm:$0xff]  ;;  %v133_v20 = vld [vmem:[#allocation4 + $0x220] sm:$0xff]  ;;  %v135_v22 = vld [vmem:[#allocation4 + $0x230] sm:$0xff]  ;;  %v2075_v24 = vpack.c.bf16 %v114_v15, %v105_v14  ;;  %v2107_v25 = vpack.c.bf16 %v116_v18, %v107_v16 }
  0x4b   : > { %2032 = vmatpush1.bf16.msra.mxu0 %v2031_v44  ;;  %2064 = vmatpush1.bf16.msra.mxu1 %v2063_v45  ;;  %v2077_v26 = vpack.c.bf16 %v133_v20, %v124_v19  ;;  %v123_v27 = vld [vmem:[#allocation4 + $0x1d0] sm:$0xff]  ;;  %v132_v28 = vld [vmem:[#allocation4 + $0x218] sm:$0xff]  ;;  %v125_v29 = vld [vmem:[#allocation4 + $0x1e0] sm:$0xff]  ;;  %v2109_v30 = vpack.c.bf16 %v135_v22, %v126_v21 }
  0x4c   : > { %2066 = vmatprep.subr.bf16.mxu0 %v2065_v46  ;;  %2098 = vmatprep.subr.bf16.mxu1 %v2097_v50  ;;  %v134_v31 = vld [vmem:[#allocation4 + $0x228] sm:$0xff]  ;;  %v151_v33 = vld [vmem:[#allocation4 + $0x2b0] sm:$0xff]  ;;  %v144_v34 = vld [vmem:[#allocation4 + $0x278] sm:$0xff]  ;;  %v2079_v36 = vpack.c.bf16 %v132_v28, %v123_v27 }
  0x4d   : > { %v142_v32 = vld [vmem:[#allocation4 + $0x268] sm:$0xff]  ;;  %v153_v35 = vld [vmem:[#allocation4 + $0x2c0] sm:$0xff]  ;;  %v2111_v38 = vpack.c.bf16 %v134_v31, %v125_v29  ;;  %v143_v43 = vld [vmem:[#allocation4 + $0x270] sm:$0xff] }
  0x4e   : > { %274 = vmatmul.mubr.f32.vlgmr.msra.gmra.mrb[0].mxu0 %v2324_v23  ;;  %435 = vmatmul.mubr.f32.vlgmr.msra.gmra.mrb[0].mxu1 %v2324_v23  ;;  %v2081_v39 = vpack.c.bf16 %v151_v33, %v142_v32  ;;  %v141_v40 = vld [vmem:[#allocation4 + $0x260] sm:$0xff]  ;;  %v150_v42 = vld [vmem:[#allocation4 + $0x2a8] sm:$0xff]  ;;  %v2113_v44 = vpack.c.bf16 %v153_v35, %v144_v34  ;;  %v152_v45 = vld [vmem:[#allocation4 + $0x2b8] sm:$0xff] }
  0x4f   : > { %2068 = vmatpush1.bf16.msra.mxu0 %v2067_v56  ;;  %2100 = vmatpush1.bf16.msra.mxu1 %v2099_v59  ;;  %v160_v46 = vld [vmem:[#allocation4 + $0x2f8] sm:$0xff]  ;;  %v169_v47 = vld [vmem:[#allocation4 + $0x340] sm:$0xff]  ;;  %v162_v48 = vld [vmem:[#allocation4 + $0x308] sm:$0xff]  ;;  %v2083_v51 = vpack.c.bf16 %v150_v42, %v141_v40  ;;  %v2115_v52 = vpack.c.bf16 %v152_v45, %v143_v43  ;;  %v1207_v42 = vmul.f32 64.0, %v2324_v23  ;;  %v2264_v43 = vmov 64  }
  0x50   : > { %279 = vmatprep.mubr.f32.mxu0 %v2262_v9  ;;  %440 = vmatprep.mubr.f32.mxu1 %v2262_v9  ;;  %v171_v50 = vld [vmem:[#allocation4 + $0x350] sm:$0xff]  ;;  %v2085_v54 = vpack.c.bf16 %v169_v47, %v160_v46  ;;  %v168_v56 = vld [vmem:[#allocation4 + $0x338] sm:$0xff]  ;;  %v161_v57 = vld [vmem:[#allocation4 + $0x300] sm:$0xff]  ;;  %v1210_v45 = vmul.f32 64.0, %v2336_v49  ;;  %v1209_v46 = vmul.f32 64.0, %v2328_v37  ;;  %v1212_v47 = vmul.f32 64.0, %v2344_v61 }
  0x51   : > { %2070 = vmatprep.subr.bf16.mxu0 %v2069_v62  ;;  %2102 = vmatprep.subr.bf16.mxu1 %v2101_v4  ;;  %v159_v55 = vld [vmem:[#allocation4 + $0x2f0] sm:$0xff]  ;;  %v2117_v58 = vpack.c.bf16 %v171_v50, %v162_v48  ;;  %v170_v59 = vld [vmem:[#allocation4 + $0x348] sm:$0xff]  ;;  %v180_v63 = vld [vmem:[#allocation4 + $0x398] sm:$0xff]  ;;  %v1211_v48 = vmul.f32 64.0, %v2339_v53 }
  0x52   : > { %280 = vmatmul.mubr.f32.gmra.mrb[2].mxu0 %v2331_v41  ;;  %441 = vmatmul.mubr.f32.gmra.mrb[2].mxu1 %v2331_v41  ;;  %v178_v60 = vld [vmem:[#allocation4 + $0x388] sm:$0xff]  ;;  %v187_v62 = vld [vmem:[#allocation4 + $0x3d0] sm:$0xff]  ;;  %v189_v2 = vld [vmem:[#allocation4 + $0x3e0] sm:$0xff]  ;;  %v2087_v4 = vpack.c.bf16 %v168_v56, %v159_v55  ;;  %v2119_v5 = vpack.c.bf16 %v170_v59, %v161_v57 }
  0x53   : > { %285 = vmatprep.mubr.f32.mxu0 %v2262_v9  ;;  %446 = vmatprep.mubr.f32.mxu1 %v2262_v9  ;;  %v2089_v6 = vpack.c.bf16 %v187_v62, %v178_v60  ;;  %v177_v7 = vld [vmem:[#allocation4 + $0x380] sm:$0xff]  ;;  %v186_v8 = vld [vmem:[#allocation4 + $0x3c8] sm:$0xff]  ;;  %v179_v10 = vld [vmem:[#allocation4 + $0x390] sm:$0xff] }
  0x54   : > { %2072 = vmatpush1.bf16.msra.mxu0 %v2071_v11  ;;  %2104 = vmatpush1.bf16.msra.mxu1 %v2103_v12  ;;  %v2121_v11 = vpack.c.bf16 %v189_v2, %v180_v63  ;;  %v188_v12 = vld [vmem:[#allocation4 + $0x3d8] sm:$0xff]  ;;  %v205_v14 = vld [vmem:[#allocation4 + $0x460] sm:$0xff]  ;;  %v198_v15 = vld [vmem:[#allocation4 + $0x428] sm:$0xff] }
  0x55   : > { %2074 = vmatprep.subr.bf16.mxu0 %v2073_v13  ;;  %2106 = vmatprep.subr.bf16.mxu1 %v2105_v17  ;;  %v196_v13 = vld [vmem:[#allocation4 + $0x418] sm:$0xff]  ;;  %v207_v16 = vld [vmem:[#allocation4 + $0x470] sm:$0xff]  ;;  %v2091_v17 = vpack.c.bf16 %v186_v8, %v177_v7  ;;  %v2123_v18 = vpack.c.bf16 %v188_v12, %v179_v10  ;;  %v197_v22 = vld [vmem:[#allocation4 + $0x420] sm:$0xff]  ;;  %v1213_v7 = vmul.f32 64.0, %v2347_v3 }
  0x56   : > { %286 = vmatmul.mubr.f32.gmra.mrb[4].mxu0 %v2328_v37  ;;  %447 = vmatmul.mubr.f32.gmra.mrb[4].mxu1 %v2328_v37  ;;  %v2093_v19 = vpack.c.bf16 %v205_v14, %v196_v13  ;;  %v195_v20 = vld [vmem:[#allocation4 + $0x410] sm:$0xff]  ;;  %v204_v21 = vld [vmem:[#allocation4 + $0x458] sm:$0xff]  ;;  %v82_v27 = vld [vmem:[#allocation4 + $0x88] sm:$0xff] }
  0x57   : > { %291 = vmatprep.mubr.f32.mxu0 %v2262_v9  ;;  %452 = vmatprep.mubr.f32.mxu1 %v2262_v9  ;;  %v2379_v28 = vld [vmem:[%s2321_s9 + $0x38] sm:$0xff]  ;;  %v2095_v29 = vpack.c.bf16 %v204_v21, %v195_v20  ;;  %v2388_v32 = vld [vmem:[%s2321_s9 + $0x40] sm:$0xff]  ;;  %v2397_v33 = vld [vmem:[%s2321_s9 + $0x48] sm:$0xff] }
  0x58   : > { %2076 = vmatpush1.bf16.msra.mxu0 %v2075_v24  ;;  %2108 = vmatpush1.bf16.msra.mxu1 %v2107_v25  ;;  %v2125_v24 = vpack.c.bf16 %v207_v16, %v198_v15  ;;  %v206_v25 = vld [vmem:[#allocation4 + $0x468] sm:$0xff]  ;;  %v2407_v34 = vld [vmem:[%s2321_s9 + $0x50] sm:$0xff]  ;;  %v2412_v35 = vld [vmem:[%s2321_s9 + $0x58] sm:$0xff]  ;;  %v1214_v50 = vmul.f32 64.0, %v2379_v28  ;;  %v1215_v12 = vmul.f32 64.0, %v2388_v32  ;;  %v1216_v15 = vmul.f32 64.0, %v2397_v33 }
  0x59   : > { %2078 = vmatprep.subr.bf16.mxu0 %v2077_v26  ;;  %2110 = vmatprep.subr.bf16.mxu1 %v2109_v30  ;;  %v73_v26 = vld [vmem:[#allocation4 + $0x40] sm:$0xff]  ;;  %v2127_v30 = vpack.c.bf16 %v206_v25, %v197_v22  ;;  %v2436_v40 = vld [vmem:[%s2321_s9 + $0x78] sm:$0xff]  ;;  %v118_v56 = vld [vmem:[#allocation4 + $0x1a8] sm:$0xff]  ;;  %vm1758_vm7 = vcmp.lt.f32.partialorder %v2379_v28, 16.0  ;;  %vm1759_vm8 = vcmp.lt.f32.partialorder %v2388_v32, 16.0  ;;  %vm1760_vm9 = vcmp.lt.f32.partialorder %v2397_v33, 16.0 }
  0x5a   : > { %292 = vmatmul.mubr.f32.gmra.mrb[6].mxu0 %v2336_v49  ;;  %453 = vmatmul.mubr.f32.gmra.mrb[6].mxu1 %v2336_v49  ;;  %v2382_v31 = vpack.c.bf16 %v82_v27, %v73_v26  ;;  %v109_v55 = vld [vmem:[#allocation4 + $0x160] sm:$0xff]  ;;  %v136_v59 = vld [vmem:[#allocation4 + $0x238] sm:$0xff]  ;;  %v154_v63 = vld [vmem:[#allocation4 + $0x2c8] sm:$0xff]  ;;  %v1222_v22 = vmul.f32 64.0, %v2436_v40  ;;  %vm1761_vm10 = vcmp.lt.f32.partialorder %v2407_v34, 16.0  ;;  %vm1762_vm11 = vcmp.lt.f32.partialorder %v2412_v35, 16.0 }
  0x5b   : > { %297 = vmatprep.mubr.f32.mxu0 %v2262_v9  ;;  %458 = vmatprep.mubr.f32.mxu1 %v2262_v9  ;;  %v2137_v57 = vpack.c.bf16 %v118_v56, %v109_v55  ;;  %v145_v62 = vld [vmem:[#allocation4 + $0x280] sm:$0xff]  ;;  %v190_v10 = vld [vmem:[#allocation4 + $0x3e8] sm:$0xff]  ;;  %v199_v13 = vld [vmem:[#allocation4 + $0x430] sm:$0xff]  ;;  %vm1766_vm15 = vcmp.lt.f32.partialorder %v2436_v40, 16.0 }
  0x5c   : > { %2080 = vmatpush1.bf16.msra.mxu0 %v2079_v36  ;;  %2112 = vmatpush1.bf16.msra.mxu1 %v2111_v38  ;;  %v2419_v36 = vld [vmem:[%s2321_s9 + $0x60] sm:$0xff]  ;;  %v2424_v38 = vld [vmem:[%s2321_s9 + $0x68] sm:$0xff]  ;;  %v2145_v2 = vpack.c.bf16 %v154_v63, %v145_v62  ;;  %v208_v14 = vld [vmem:[#allocation4 + $0x478] sm:$0xff] }
  0x5d   : > { %2082 = vmatprep.subr.bf16.mxu0 %v2081_v39  ;;  %2114 = vmatprep.subr.bf16.mxu1 %v2113_v44  ;;  %v2431_v39 = vld [vmem:[%s2321_s9 + $0x70] sm:$0xff]  ;;  %v1208_v44 = vmul.f32 64.0, %v2331_v41  ;;  %v181_v8 = vld [vmem:[#allocation4 + $0x3a0] sm:$0xff]  ;;  %v2157_v16 = vpack.c.bf16 %v208_v14, %v199_v13  ;;  %v1220_v20 = vmul.f32 64.0, %v2424_v38  ;;  %vm1763_vm12 = vcmp.lt.f32.partialorder %v2419_v36, 16.0 }
  0x5e   : > { %298 = vmatmul.mubr.f32.gmra.mrb[8].mxu0 %v2339_v53  ;;  %459 = vmatmul.mubr.f32.gmra.mrb[8].mxu1 %v2339_v53  ;;  %v1221_v21 = vmul.f32 64.0, %v2431_v39  ;;  %vm1764_vm13 = vcmp.lt.f32.partialorder %v2424_v38, 16.0  ;;  %vm1765_vm14 = vcmp.lt.f32.partialorder %v2431_v39, 16.0 }
  0x5f   : > { %303 = vmatprep.mubr.f32.mxu0 %v2262_v9  ;;  %464 = vmatprep.mubr.f32.mxu1 %v2262_v9 }
  0x60   : > { %2084 = vmatpush1.bf16.msra.mxu0 %v2083_v51  ;;  %2116 = vmatpush1.bf16.msra.mxu1 %v2115_v52  ;;  %v91_v51 = vld [vmem:[#allocation4 + $0xd0] sm:$0xff]  ;;  %v100_v52 = vld [vmem:[#allocation4 + $0x118] sm:$0xff] }
  0x61   : > { %2086 = vmatprep.subr.bf16.mxu0 %v2085_v54  ;;  %2118 = vmatprep.subr.bf16.mxu1 %v2117_v58  ;;  %v2133_v54 = vpack.c.bf16 %v100_v52, %v91_v51  ;;  %v127_v58 = vld [vmem:[#allocation4 + $0x1f0] sm:$0xff] }
  0x62   : > { %304 = vmatmul.mubr.f32.gmra.mrb[10].mxu0 %v2344_v61  ;;  %465 = vmatmul.mubr.f32.gmra.mrb[10].mxu1 %v2344_v61  ;;  %v2141_v60 = vpack.c.bf16 %v136_v59, %v127_v58 }
  0x63   : > { %309 = vmatprep.mubr.f32.mxu0 %v2262_v9  ;;  %470 = vmatprep.mubr.f32.mxu1 %v2262_v9 }
  0x64   : > { %2088 = vmatpush1.bf16.msra.mxu0 %v2087_v4  ;;  %2120 = vmatpush1.bf16.msra.mxu1 %v2119_v5  ;;  %v163_v4 = vld [vmem:[#allocation4 + $0x310] sm:$0xff]  ;;  %v172_v5 = vld [vmem:[#allocation4 + $0x358] sm:$0xff] }
  0x65   : > { %2090 = vmatprep.subr.bf16.mxu0 %v2089_v6  ;;  %2122 = vmatprep.subr.bf16.mxu1 %v2121_v11  ;;  %v2149_v6 = vpack.c.bf16 %v172_v5, %v163_v4  ;;  %v2153_v11 = vpack.c.bf16 %v190_v10, %v181_v8 }
  0x66   : > { %310 = vmatmul.mubr.f32.gmra.mrb[12].mxu0 %v2347_v3  ;;  %471 = vmatmul.mubr.f32.gmra.mrb[12].mxu1 %v2347_v3 }
  0x67   : > { %315 = vmatprep.mubr.f32.mxu0 %v2262_v9  ;;  %476 = vmatprep.mubr.f32.mxu1 %v2262_v9 }
  0x68   : > { %2092 = vmatpush1.bf16.msra.mxu0 %v2091_v17  ;;  %2124 = vmatpush1.bf16.msra.mxu1 %v2123_v18  ;;  %v1217_v17 = vmul.f32 64.0, %v2407_v34  ;;  %v1218_v18 = vmul.f32 64.0, %v2412_v35 }
  0x69   : > { %2094 = vmatprep.subr.bf16.mxu0 %v2093_v19  ;;  %2126 = vmatprep.subr.bf16.mxu1 %v2125_v24  ;;  %v1219_v19 = vmul.f32 64.0, %v2419_v36  ;;  %v2265_v24 = vmov 0  }
  0x6a   : > { %316 = vmatmul.mubr.f32.gmra.mrb[14].mxu0 %v2379_v28  ;;  %477 = vmatmul.mubr.f32.gmra.mrb[14].mxu1 %v2379_v28  ;;  %v1767_v25 = vsel %vm1751_vm0, 1, %v2265_v24  ;;  %v1768_v26 = vsel %vm1752_vm1, 1, %v2265_v24  ;;  %v1769_v27 = vsel %vm1753_vm2, 1, %v2265_v24 }
  0x6b   : > { %321 = vmatprep.mubr.f32.mxu0 %v2262_v9  ;;  %482 = vmatprep.mubr.f32.mxu1 %v2262_v9 }
  0x6c   : > { %2096 = vmatpush1.bf16.msra.mxu0 %v2095_v29  ;;  %2128 = vmatpush1.bf16.msra.mxu1 %v2127_v30  ;;  %v1770_v29 = vsel %vm1754_vm3, 1, %v2265_v24  ;;  %v1771_v30 = vsel %vm1755_vm4, 1, %v2265_v24 }
  0x6d   : > { %2130 = vmatprep.subr.bf16.mxu0 %v2382_v31  ;;  %1035 = vperm.xlu1 %2197, %v2379_v28  }
  0x6e   : > { %322 = vmatmul.mubr.f32.gmra.mrb[16].mxu0 %v2388_v32  ;;  %483 = vmatmul.mubr.f32.gmra.mrb[16].mxu1 %v2388_v32 }
  0x6f   : > { %327 = vmatprep.mubr.f32.mxu0 %v2262_v9  ;;  %488 = vmatprep.mubr.f32.mxu1 %v2262_v9 }
  0x70   : > { %1040 = vperm.xlu0 %2196, %v2388_v32   ;;  %2161 = vmatprep.subr.bf16.mxu1 %v2382_v31 }
  0x71   : > { %1045 = vperm.xlu1 %2197, %v2397_v33  }
  0x72   : > { %328 = vmatmul.mubr.f32.gmra.mrb[18].mxu0 %v2397_v33  ;;  %489 = vmatmul.mubr.f32.gmra.mrb[18].mxu1 %v2397_v33 }
  0x73   : > { %333 = vmatprep.mubr.f32.mxu0 %v2262_v9  ;;  %494 = vmatprep.mubr.f32.mxu1 %v2262_v9 }
  0x74   : > { %1050 = vperm.xlu0 %2196, %v2407_v34  }
  0x75   : > { %1055 = vperm.xlu1 %2197, %v2412_v35  }
  0x76   : > { %334 = vmatmul.mubr.f32.gmra.mrb[20].mxu0 %v2407_v34  ;;  %495 = vmatmul.mubr.f32.gmra.mrb[20].mxu1 %v2407_v34 }
  0x77   : > { %339 = vmatprep.mubr.f32.mxu0 %v2262_v9  ;;  %500 = vmatprep.mubr.f32.mxu1 %v2262_v9 }
  0x78   : > { %1060 = vperm.xlu0 %2196, %v2419_v36  }
  0x79   : > { %1065 = vperm.xlu1 %2197, %v2424_v38  }
  0x7a   : > { %340 = vmatmul.mubr.f32.gmra.mrb[22].mxu0 %v2412_v35  ;;  %501 = vmatmul.mubr.f32.gmra.mrb[22].mxu1 %v2412_v35 }
  0x7b   : > { %345 = vmatprep.mubr.f32.mxu0 %v2262_v9  ;;  %506 = vmatprep.mubr.f32.mxu1 %v2262_v9 }
  0x7c   : > { %1070 = vperm.xlu0 %2196, %v2431_v39  }
  0x7d   : > { %1075 = vperm.xlu1 %2197, %v2436_v40  }
  0x7e   : > { %346 = vmatmul.mubr.f32.gmra.mrb[24].mxu0 %v2419_v36  ;;  %507 = vmatmul.mubr.f32.gmra.mrb[24].mxu1 %v2419_v36 }
  0x7f   : > { %351 = vmatprep.mubr.f32.mxu0 %v2262_v9  ;;  %512 = vmatprep.mubr.f32.mxu1 %v2262_v9 }
  0x80   : > { %2198 = vset.pattern.permute.xlu0 %v2264_v43 }
  0x81   : > { %1225 = vperm.xlu0 %2198, %v1207_v42   ;;  %2199 = vset.pattern.permute.xlu1 %v2264_v43  ;;  %v1773_v42 = vsel %vm1757_vm6, 1, %v2265_v24  ;;  %v1774_v43 = vsel %vm1758_vm7, 1, %v2265_v24 }
  0x82   : > { %352 = vmatmul.mubr.f32.gmra.mrb[26].mxu0 %v2424_v38  ;;  %513 = vmatmul.mubr.f32.gmra.mrb[26].mxu1 %v2424_v38 }
  0x83   : > { %357 = vmatprep.mubr.f32.mxu0 %v2262_v9  ;;  %518 = vmatprep.mubr.f32.mxu1 %v2262_v9 }
  0x84   : > { %1230 = vperm.xlu1 %2199, %v1208_v44   ;;  %v1775_v44 = vsel %vm1759_vm8, 1, %v2265_v24 }
  0x85   : > { %1240 = vperm.xlu0 %2198, %v1210_v45   ;;  %v1776_v45 = vsel %vm1760_vm9, 1, %v2265_v24 }
  0x86   : > { %358 = vmatmul.mubr.f32.gmra.mrb[28].mxu0 %v2431_v39  ;;  %519 = vmatmul.mubr.f32.gmra.mrb[28].mxu1 %v2431_v39 }
  0x87   : > { %363 = vmatprep.mubr.f32.mxu0 %v2262_v9  ;;  %524 = vmatprep.mubr.f32.mxu1 %v2262_v9 }
  0x88   : > { %1235 = vperm.xlu1 %2199, %v1209_v46   ;;  %v1777_v46 = vsel %vm1761_vm10, 1, %v2265_v24 }
  0x89   : > { %1250 = vperm.xlu0 %2198, %v1212_v47  }
  0x8a   : > { %364 = vmatmul.mubr.f32.gmra.mrb[30].mxu0 %v2436_v40  ;;  %525 = vmatmul.mubr.f32.gmra.mrb[30].mxu1 %v2436_v40 }
  0x8b   : > { %595 = vmatprep.mubr.f32.mxu0 %v2262_v9  ;;  %756 = vmatprep.mubr.f32.mxu1 %v2262_v9 }
  0x8c   : > { %1245 = vperm.xlu1 %2199, %v1211_v48  }
  0x8d   : > { %1260 = vperm.xlu0 %2198, %v1214_v50  }
  0x8e   : > { %596 = vmatmul.mubr.f32.vlgmr.msra.gmra.mrb[32].mxu0 %v2324_v23  ;;  %757 = vmatmul.mubr.f32.vlgmr.msra.gmra.mrb[32].mxu1 %v2324_v23 }
  0x8f   : > { %2132 = vmatpush3.bf16.msra.mxu0 %v2382_v31  ;;  %601 = vmatprep.mubr.f32.mxu0 %v2262_v9 }
  0x90   : > { %762 = vmatprep.mubr.f32.mxu1 %v2262_v9  ;;  %2169 = vmatpush3.bf16.msra.mxu1 %v2382_v31  ;;  %v1772_v31 = vsel %vm1756_vm5, 1, %v2265_v24 }
  0x91   : > { %2134 = vmatprep.subr.bf16.mxu0 %v2133_v54  ;;  %2162 = vmatprep.subr.bf16.mxu1 %v2133_v54 }
  0x92   : > { %602 = vmatmul.mubr.f32.gmra.mrb[34].mxu0 %v2331_v41  ;;  %763 = vmatmul.mubr.f32.gmra.mrb[34].mxu1 %v2331_v41 }
  0x93   : > { %607 = vmatprep.mubr.f32.mxu0 %v2262_v9  ;;  %768 = vmatprep.mubr.f32.mxu1 %v2262_v9 }
  0x94   : > { %2136 = vmatpush3.bf16.msra.mxu0 %v2133_v54  ;;  %2170 = vmatpush3.bf16.msra.mxu1 %v2133_v54 }
  0x95   : > { %2138 = vmatprep.subr.bf16.mxu0 %v2137_v57  ;;  %2163 = vmatprep.subr.bf16.mxu1 %v2137_v57 }
  0x96   : > { %608 = vmatmul.mubr.f32.gmra.mrb[36].mxu0 %v2328_v37  ;;  %769 = vmatmul.mubr.f32.gmra.mrb[36].mxu1 %v2328_v37 }
  0x97   : > { %613 = vmatprep.mubr.f32.mxu0 %v2262_v9  ;;  %774 = vmatprep.mubr.f32.mxu1 %v2262_v9 }
  0x98   : > { %2140 = vmatpush3.bf16.msra.mxu0 %v2137_v57  ;;  %2171 = vmatpush3.bf16.msra.mxu1 %v2137_v57 }
  0x99   : > { %2142 = vmatprep.subr.bf16.mxu0 %v2141_v60  ;;  %2164 = vmatprep.subr.bf16.mxu1 %v2141_v60 }
  0x9a   : > { %614 = vmatmul.mubr.f32.gmra.mrb[38].mxu0 %v2336_v49  ;;  %775 = vmatmul.mubr.f32.gmra.mrb[38].mxu1 %v2336_v49 }
  0x9b   : > { %619 = vmatprep.mubr.f32.mxu0 %v2262_v9  ;;  %780 = vmatprep.mubr.f32.mxu1 %v2262_v9 }
  0x9c   : > { %2144 = vmatpush3.bf16.msra.mxu0 %v2141_v60  ;;  %2172 = vmatpush3.bf16.msra.mxu1 %v2141_v60 }
  0x9d   : > { %2146 = vmatprep.subr.bf16.mxu0 %v2145_v2  ;;  %2165 = vmatprep.subr.bf16.mxu1 %v2145_v2 }
  0x9e   : > { %620 = vmatmul.mubr.f32.gmra.mrb[40].mxu0 %v2339_v53  ;;  %781 = vmatmul.mubr.f32.gmra.mrb[40].mxu1 %v2339_v53 }
  0x9f   : > { %625 = vmatprep.mubr.f32.mxu0 %v2262_v9  ;;  %786 = vmatprep.mubr.f32.mxu1 %v2262_v9 }
  0xa0   : > { %2148 = vmatpush3.bf16.msra.mxu0 %v2145_v2  ;;  %2173 = vmatpush3.bf16.msra.mxu1 %v2145_v2 }
  0xa1   : > { %2150 = vmatprep.subr.bf16.mxu0 %v2149_v6  ;;  %1255 = vperm.xlu1 %2199, %v1213_v7  }
  0xa2   : > { %626 = vmatmul.mubr.f32.gmra.mrb[42].mxu0 %v2344_v61  ;;  %787 = vmatmul.mubr.f32.gmra.mrb[42].mxu1 %v2344_v61 }
  0xa3   : > { %631 = vmatprep.mubr.f32.mxu0 %v2262_v9  ;;  %792 = vmatprep.mubr.f32.mxu1 %v2262_v9 }
  0xa4   : > { %2152 = vmatpush3.bf16.msra.mxu0 %v2149_v6  ;;  %2166 = vmatprep.subr.bf16.mxu1 %v2149_v6 }
  0xa5   : > { %2154 = vmatprep.subr.bf16.mxu0 %v2153_v11  ;;  %2174 = vmatpush3.bf16.msra.mxu1 %v2149_v6 }
  0xa6   : > { %632 = vmatmul.mubr.f32.gmra.mrb[44].mxu0 %v2347_v3  ;;  %793 = vmatmul.mubr.f32.gmra.mrb[44].mxu1 %v2347_v3 }
  0xa7   : > { %637 = vmatprep.mubr.f32.mxu0 %v2262_v9  ;;  %798 = vmatprep.mubr.f32.mxu1 %v2262_v9 }
  0xa8   : > { %2156 = vmatpush3.bf16.msra.mxu0 %v2153_v11  ;;  %1265 = vperm.xlu1 %2199, %v1215_v12  }
  0xa9   : > { %2167 = vmatprep.subr.bf16.mxu1 %v2153_v11  ;;  %1270 = vperm.xlu0 %2198, %v1216_v15  }
  0xaa   : > { %638 = vmatmul.mubr.f32.gmra.mrb[46].mxu0 %v2379_v28  ;;  %2175 = vmatpush3.bf16.msra.mxu1 %v2153_v11 }
  0xab   : > { %799 = vmatmul.mubr.f32.gmra.mrb[46].mxu1 %v2379_v28  ;;  %643 = vmatprep.mubr.f32.mxu0 %v2262_v9 }
  0xac   : > { %804 = vmatprep.mubr.f32.mxu1 %v2262_v9  ;;  %2158 = vmatprep.subr.bf16.mxu0 %v2157_v16 }
  0xad   : > { %1275 = vperm.xlu1 %2199, %v1217_v17   ;;  %2168 = vmatprep.subr.bf16.mxu1 %v2157_v16 }
  0xae   : > { %644 = vmatmul.mubr.f32.gmra.mrb[48].mxu0 %v2388_v32  ;;  %2176 = vmatpush3.bf16.msra.mxu1 %v2157_v16 }
  0xaf   : > { %805 = vmatmul.mubr.f32.gmra.mrb[48].mxu1 %v2388_v32  ;;  %649 = vmatprep.mubr.f32.mxu0 %v2262_v9 }
  0xb0   : > { %810 = vmatprep.mubr.f32.mxu1 %v2262_v9  ;;  %2160 = vmatpush3.bf16.msra.mxu0 %v2157_v16 }
  0xb1   : > { %1280 = vperm.xlu0 %2198, %v1218_v18   ;;  %1285 = vperm.xlu1 %2199, %v1219_v19  }
  0xb2   : > { %650 = vmatmul.mubr.f32.gmra.mrb[50].mxu0 %v2397_v33 }
  0xb3   : > { %811 = vmatmul.mubr.f32.gmra.mrb[50].mxu1 %v2397_v33  ;;  %655 = vmatprep.mubr.f32.mxu0 %v2262_v9 }
  0xb4   : > { %816 = vmatprep.mubr.f32.mxu1 %v2262_v9 }
  0xb5   : > { %1290 = vperm.xlu0 %2198, %v1220_v20   ;;  %1295 = vperm.xlu1 %2199, %v1221_v21  }
  0xb6   : > { %656 = vmatmul.mubr.f32.gmra.mrb[52].mxu0 %v2407_v34 }
  0xb7   : > { %817 = vmatmul.mubr.f32.gmra.mrb[52].mxu1 %v2407_v34  ;;  %661 = vmatprep.mubr.f32.mxu0 %v2262_v9 }
  0xb8   : > { %822 = vmatprep.mubr.f32.mxu1 %v2262_v9 }
  0xb9   : > { %1300 = vperm.xlu0 %2198, %v1222_v22   ;;  %1784 = vperm.xlu1 %2199, %v1767_v25  }
  0xba   : > { %662 = vmatmul.mubr.f32.gmra.mrb[54].mxu0 %v2412_v35 }
  0xbb   : > { %823 = vmatmul.mubr.f32.gmra.mrb[54].mxu1 %v2412_v35  ;;  %667 = vmatprep.mubr.f32.mxu0 %v2262_v9 }
  0xbc   : > { %828 = vmatprep.mubr.f32.mxu1 %v2262_v9 }
  0xbd   : > { %1787 = vperm.xlu0 %2198, %v1768_v26   ;;  %1790 = vperm.xlu1 %2199, %v1769_v27  }
  0xbe   : > { %668 = vmatmul.mubr.f32.gmra.mrb[56].mxu0 %v2419_v36 }
  0xbf   : > { %829 = vmatmul.mubr.f32.gmra.mrb[56].mxu1 %v2419_v36  ;;  %673 = vmatprep.mubr.f32.mxu0 %v2262_v9 }
  0xc0   : > { %834 = vmatprep.mubr.f32.mxu1 %v2262_v9 }
  0xc1   : > { %1793 = vperm.xlu0 %2198, %v1770_v29   ;;  %1796 = vperm.xlu1 %2199, %v1771_v30  }
  0xc2   : > { %674 = vmatmul.mubr.f32.gmra.mrb[58].mxu0 %v2424_v38 }
  0xc3   : > { %835 = vmatmul.mubr.f32.gmra.mrb[58].mxu1 %v2424_v38  ;;  %679 = vmatprep.mubr.f32.mxu0 %v2262_v9 }
  0xc4   : > { %840 = vmatprep.mubr.f32.mxu1 %v2262_v9 }
  0xc5   : > { %1799 = vperm.xlu0 %2198, %v1772_v31   ;;  %1802 = vperm.xlu1 %2199, %v1773_v42  }
  0xc6   : > { %680 = vmatmul.mubr.f32.gmra.mrb[60].mxu0 %v2431_v39 }
  0xc7   : > { %841 = vmatmul.mubr.f32.gmra.mrb[60].mxu1 %v2431_v39  ;;  %685 = vmatprep.mubr.f32.mxu0 %v2262_v9 }
  0xc8   : > { %846 = vmatprep.mubr.f32.mxu1 %v2262_v9  ;;  %v1778_v9 = vsel %vm1762_vm11, 1, %v2265_v24 }
  0xc9   : > { %1805 = vperm.xlu0 %2198, %v1774_v43   ;;  %1808 = vperm.xlu1 %2199, %v1775_v44  }
  0xca   : > { %686 = vmatmul.mubr.f32.gmra.mrb[62].mxu0 %v2436_v40 }
  0xcb   : > { %847 = vmatmul.mubr.f32.gmra.mrb[62].mxu1 %v2436_v40  ;;  %1977 = vmatprep.mubr.f32.mxu0 %v2324_v23  ;;  %v1779_v23 = vsel %vm1763_vm12, 1, %v2265_v24 }
  0xcc   : > { %1989 = vmatprep.mubr.f32.mxu1 %v2388_v32  ;;  %v1782_v32 = vsel %vm1766_vm15, 1, %v2265_v24 }
  0xcd   : > { %1811 = vperm.xlu0 %2198, %v1776_v45   ;;  %1814 = vperm.xlu1 %2199, %v1777_v46  }
  0xce   : > { %1978 = vmatmul.mubr.f32.vlgmr.msra.gmra.mrb[64].mxu0 %v2331_v41  ;;  %v1780_v41 = vsel %vm1764_vm13, 1, %v2265_v24 }
  0xcf   : > { %1990 = vmatmul.mubr.f32.vlgmr.msra.gmra.mrb[64].mxu1 %v2397_v33  ;;  %1980 = vmatprep.mubr.f32.mxu0 %v2328_v37  ;;  %v1781_v37 = vsel %vm1765_vm14, 1, %v2265_v24 }
  0xd0   : > { %1992 = vmatprep.mubr.f32.mxu1 %v2407_v34 }
  0xd1   : > { %1817 = vperm.xlu0 %2198, %v1778_v9   ;;  %1820 = vperm.xlu1 %2199, %v1779_v23  }
  0xd2   : > { %1981 = vmatmul.mubr.f32.gmra.mrb[66].mxu0 %v2336_v49  ;;  %v2583_v49 = vpop.permute.xlu1 %1010 }
  0xd3   : > { %1993 = vmatmul.mubr.f32.gmra.mrb[66].mxu1 %v2412_v35  ;;  %1983 = vmatprep.mubr.f32.mxu0 %v2339_v53  ;;  %3799 = vst [vmem:[#allocation10_spill] sm:$0xff] %v2583_v49  ;;  %v2585_v53 = vpop.permute.xlu0 %1000 }
  0xd4   : > { %1995 = vmatprep.mubr.f32.mxu1 %v2419_v36  ;;  %3800 = vst [vmem:[#allocation11_spill] sm:$0xff] %v2585_v53 }
  0xd5   : > { %1823 = vperm.xlu0 %2198, %v1780_v41   ;;  %1826 = vperm.xlu1 %2199, %v1781_v37  }
  0xd6   : > { %1984 = vmatmul.mubr.f32.gmra.mrb[68].mxu0 %v2344_v61  ;;  %v2587_v33 = vpop.permute.xlu1 %1015 }
  0xd7   : > { %1996 = vmatmul.mubr.f32.gmra.mrb[68].mxu1 %v2424_v38  ;;  %1986 = vmatprep.mubr.f32.mxu0 %v2347_v3  ;;  %3801 = vst [vmem:[#allocation12_spill] sm:$0xff] %v2587_v33  ;;  %v2589_v61 = vpop.permute.xlu0 %1005 }
  0xd8   : > { %1998 = vmatprep.mubr.f32.mxu1 %v2431_v39  ;;  %3802 = vst [vmem:[#allocation13_spill] sm:$0xff] %v2589_v61 }
  0xd9   : > { %1829 = vperm.xlu0 %2198, %v1782_v32  }
  0xda   : > { %1987 = vmatmul.mubr.f32.gmra.mrb[70].mxu0 %v2379_v28  ;;  %v2591_v34 = vpop.permute.xlu1 %1025 }
  0xdb   : > { %1999 = vmatmul.mubr.f32.gmra.mrb[70].mxu1 %v2436_v40  ;;  %3803 = vst [vmem:[#allocation14_spill] sm:$0xff] %v2591_v34  ;;  %v2593_v35 = vpop.permute.xlu0 %1020 }
  0xdc   : > { %3804 = vst [vmem:[#allocation15_spill] sm:$0xff] %v2593_v35 }
  0xdf   : > { %v2597_v36 = vpop.permute.xlu0 %1030 }
  0xe0   : > { %3806 = vst [vmem:[#allocation17_spill] sm:$0xff] %v2597_v36 }
  0xec   : > { %v2595_v3 = vpop.permute.xlu1 %1035 }
  0xed   : > { %3805 = vst [vmem:[#allocation16_spill] sm:$0xff] %v2595_v3 }
  0xef   : > { %v2601_v28 = vpop.permute.xlu0 %1040 }
  0xf0   : > { %v2599_v38 = vpop.permute.xlu1 %1045  ;;  %3808 = vst [vmem:[#allocation19_spill] sm:$0xff] %v2601_v28 }
  0xf1   : > { %3807 = vst [vmem:[#allocation18_spill] sm:$0xff] %v2599_v38 }
  0xf3   : > { %v2619_v55 = vpop.permute.xlu0 %1050 }
  0xf4   : > { %v2609_v48 = vpop.permute.xlu1 %1055  ;;  %3810 = vst [vmem:[#allocation21_spill] sm:$0xff] %v2619_v55 }
  0xf5   : > { %3809 = vst [vmem:[#allocation20_spill] sm:$0xff] %v2609_v48 }
  0xf7   : > { %v2633_v63 = vpop.permute.xlu0 %1060 }
  0xf8   : > { %v2623_v57 = vpop.permute.xlu1 %1065  ;;  %3812 = vst [vmem:[#allocation23_spill] sm:$0xff] %v2633_v63  ;;  %v1190_v63 = vlaneseq }
  0xf9   : > { %3811 = vst [vmem:[#allocation22_spill] sm:$0xff] %v2623_v57 }
  0xfa   : > { %v1191_v33 = vand.u32 127, %v1190_v63 }
  0xfb   : > { %v2653_v13 = vpop.permute.xlu0 %1070 }
  0xfc   : > { %v2641_v6 = vpop.permute.xlu1 %1075  ;;  %3814 = vst [vmem:[#allocation25_spill] sm:$0xff] %v2653_v13 }
  0xfd   : > { %3813 = vst [vmem:[#allocation24_spill] sm:$0xff] %v2641_v6 }
 0x100   : > { %v2673_v24 = vpop.permute.xlu0 %1225 }
 0x103   : > { %v2655_v14 = vpop.permute.xlu1 %1230 }
 0x104   : > { %v2685_v31 = vpop.permute.xlu0 %1240 }
 0x107   : > { %v2675_v25 = vpop.permute.xlu1 %1235 }
 0x108   : > { %v2697_v9 = vpop.permute.xlu0 %1250 }
 0x10b   : > { %v2687_v42 = vpop.permute.xlu1 %1245 }
 0x10c   : > { %v2709_v13 = vpop.permute.xlu0 %1260 }
 0x120   : > { %v2699_v23 = vpop.permute.xlu1 %1255 }
 0x121   : > { %v2603_v39 = vpop.f32.mrb[0].mxu0  ;;  %v2607_v47 = vpop.f32.mrb[0].mxu1 }
 0x122   : > { %v2605_v40 = vpop.f32.mrb[1].mxu0  ;;  %v2611_v50 = vpop.f32.mrb[1].mxu1 }
 0x125   : > { %v2613_v51 = vpop.f32.mrb[2].mxu0  ;;  %v2617_v54 = vpop.f32.mrb[2].mxu1 }
 0x126   : > { %v2615_v52 = vpop.f32.mrb[3].mxu0  ;;  %v2621_v56 = vpop.f32.mrb[3].mxu1 }
 0x127   : > { %v2711_v36 = vpop.permute.xlu1 %1265 }
 0x128   : > { %v2721_v55 = vpop.permute.xlu0 %1270 }
 0x129   : > { %v2625_v58 = vpop.f32.mrb[4].mxu0  ;;  %v2629_v60 = vpop.f32.mrb[4].mxu1 }
 0x12a   : > { %v2627_v59 = vpop.f32.mrb[5].mxu0  ;;  %v2631_v62 = vpop.f32.mrb[5].mxu1 }
 0x12c   : > { %v2723_v48 = vpop.permute.xlu1 %1275 }
 0x12d   : > { %v2635_v2 = vpop.f32.mrb[6].mxu0  ;;  %v2639_v5 = vpop.f32.mrb[6].mxu1 }
 0x12e   : > { %v2637_v4 = vpop.f32.mrb[7].mxu0  ;;  %v2643_v7 = vpop.f32.mrb[7].mxu1 }
 0x130   : > { %v2733_v0 = vpop.permute.xlu0 %1280  ;;  %v2735_v53 = vpop.permute.xlu1 %1285 }
 0x131   : > { %v2645_v8 = vpop.f32.mrb[8].mxu0  ;;  %v2649_v11 = vpop.f32.mrb[8].mxu1  ;;  %3828 = vst [vmem:[#allocation39_spill] sm:$0xff] %v2733_v0  ;;  %3829 = vst [vmem:[#allocation40_spill] sm:$0xff] %v2735_v53 }
 0x132   : > { %v2647_v10 = vpop.f32.mrb[9].mxu0  ;;  %v2651_v12 = vpop.f32.mrb[9].mxu1 }
 0x135   : > { %v2657_v15 = vpop.f32.mrb[10].mxu0  ;;  %v2661_v17 = vpop.f32.mrb[10].mxu1 }
 0x136   : > { %v2659_v16 = vpop.f32.mrb[11].mxu0  ;;  %v2663_v18 = vpop.f32.mrb[11].mxu1 }
 0x139   : > { %v2665_v19 = vpop.f32.mrb[12].mxu0  ;;  %v2669_v21 = vpop.f32.mrb[12].mxu1 }
 0x13a   : > { %v2667_v20 = vpop.f32.mrb[13].mxu0  ;;  %v2671_v22 = vpop.f32.mrb[13].mxu1 }
 0x13d   : > { %v2677_v26 = vpop.f32.mrb[14].mxu0  ;;  %v2681_v29 = vpop.f32.mrb[14].mxu1 }
 0x13e   : > { %v2679_v27 = vpop.f32.mrb[15].mxu0  ;;  %v2683_v30 = vpop.f32.mrb[15].mxu1 }
 0x141   : > { %v2689_v43 = vpop.f32.mrb[16].mxu0  ;;  %v2693_v45 = vpop.f32.mrb[16].mxu1 }
 0x142   : > { %v2691_v44 = vpop.f32.mrb[17].mxu0  ;;  %v2695_v46 = vpop.f32.mrb[17].mxu1 }
 0x143   : > { %3815 = vst [vmem:[#allocation26_spill] sm:$0xff] %v2695_v46 }
 0x145   : > { %v2701_v41 = vpop.f32.mrb[18].mxu0  ;;  %v2705_v32 = vpop.f32.mrb[18].mxu1 }
 0x146   : > { %3816 = vst [vmem:[#allocation27_spill] sm:$0xff] %v2701_v41  ;;  %v2703_v37 = vpop.f32.mrb[19].mxu0  ;;  %3818 = vst [vmem:[#allocation29_spill] sm:$0xff] %v2705_v32  ;;  %v2707_v6 = vpop.f32.mrb[19].mxu1  ;;  %v2749_v32 = vcvt.s32.f32 %v1191_v33 }
 0x147   : > { %3817 = vst [vmem:[#allocation28_spill] sm:$0xff] %v2703_v37  ;;  %3819 = vst [vmem:[#allocation30_spill] sm:$0xff] %v2707_v6  ;;  %v1198_v37 = vadd.s32 896, %v1191_v33 }
 0x148   : > { %vm1303_vm3 = vcmp.lt.f32.partialorder %v2749_v32, %v2673_v24 }
 0x149   : > { %v2713_v3 = vpop.f32.mrb[20].mxu0  ;;  %v2717_v35 = vpop.f32.mrb[20].mxu1 }
 0x14a   : > { %3820 = vst [vmem:[#allocation31_spill] sm:$0xff] %v2713_v3  ;;  %v2715_v57 = vpop.f32.mrb[21].mxu0  ;;  %3822 = vst [vmem:[#allocation33_spill] sm:$0xff] %v2717_v35  ;;  %v2719_v34 = vpop.f32.mrb[21].mxu1  ;;  %v1193_v35 = vadd.s32 256, %v1191_v33 }
 0x14b   : > { %3821 = vst [vmem:[#allocation32_spill] sm:$0xff] %v2715_v57  ;;  %3823 = vst [vmem:[#allocation34_spill] sm:$0xff] %v2719_v34  ;;  %v1192_v34 = vadd.s32 128, %v1191_v33  ;;  %v1194_v57 = vadd.s32 384, %v1191_v33 }
 0x14c   : > { %v2755_v46 = vcvt.s32.f32 %v1193_v35 }
 0x14d   : > { %v2725_v49 = vpop.f32.mrb[22].mxu0  ;;  %v2729_v28 = vpop.f32.mrb[22].mxu1  ;;  %v2753_v41 = vcvt.s32.f32 %v1192_v34 }
 0x14e   : > { %3824 = vst [vmem:[#allocation35_spill] sm:$0xff] %v2725_v49  ;;  %v2727_v1 = vpop.f32.mrb[23].mxu0  ;;  %3826 = vst [vmem:[#allocation37_spill] sm:$0xff] %v2729_v28  ;;  %v2731_v38 = vpop.f32.mrb[23].mxu1  ;;  %vm1305_vm6 = vcmp.lt.f32.partialorder %v2755_v46, %v2673_v24 }
 0x14f   : > { %3825 = vst [vmem:[#allocation36_spill] sm:$0xff] %v2727_v1  ;;  %3827 = vst [vmem:[#allocation38_spill] sm:$0xff] %v2731_v38  ;;  %v1195_v1 = vadd.s32 512, %v1191_v33  ;;  %v2745_v49 = vpop.permute.xlu0 %1290  ;;  %v2747_v28 = vpop.permute.xlu1 %1295  ;;  %v1197_v38 = vadd.s32 768, %v1191_v33  ;;  %vm1304_vm5 = vcmp.lt.f32.partialorder %v2753_v41, %v2673_v24 }
 0x150   : > { %3834 = vst [vmem:[#allocation45_spill] sm:$0xff] %v2745_v49  ;;  %3835 = vst [vmem:[#allocation46_spill] sm:$0xff] %v2747_v28  ;;  %vm1415_vm0 = vcmp.lt.f32.partialorder %v2749_v32, %v2747_v28  ;;  %vm1416_vm1 = vcmp.lt.f32.partialorder %v2753_v41, %v2747_v28  ;;  %vm1417_vm2 = vcmp.lt.f32.partialorder %v2755_v46, %v2747_v28 }
 0x151   : > { %v2737_v61 = vpop.f32.mrb[24].mxu0  ;;  %v2741_v6 = vpop.f32.mrb[24].mxu1  ;;  %v2767_v0 = vcvt.s32.f32 %v1195_v1  ;;  %v2775_v34 = vcvt.s32.f32 %v1197_v38  ;;  %v2783_v1 = vcvt.s32.f32 %v1198_v37 }
 0x152   : > { %3830 = vst [vmem:[#allocation41_spill] sm:$0xff] %v2737_v61  ;;  %v2739_v3 = vpop.f32.mrb[25].mxu0  ;;  %3832 = vst [vmem:[#allocation43_spill] sm:$0xff] %v2741_v6  ;;  %v2743_v63 = vpop.f32.mrb[25].mxu1  ;;  %v1196_v61 = vadd.s32 640, %v1191_v33 }
 0x153   : > { %3831 = vst [vmem:[#allocation42_spill] sm:$0xff] %v2739_v3  ;;  %3833 = vst [vmem:[#allocation44_spill] sm:$0xff] %v2743_v63  ;;  %v2757_v3 = vcvt.s32.f32 %v1194_v57  ;;  %v2773_v33 = vpop.permute.xlu0 %1300  ;;  %vm1307_vm9 = vcmp.lt.f32.partialorder %v2767_v0, %v2673_v24  ;;  %vm1309_vm12 = vcmp.lt.f32.partialorder %v2775_v34, %v2673_v24  ;;  %vm1315_vm13 = vcmp.lt.f32.partialorder %v2767_v0, %v2655_v14 }
 0x154   : > { %3840 = vst [vmem:[#allocation51_spill] sm:$0xff] %v2773_v33  ;;  %v2781_v57 = vcvt.s32.f32 %v1196_v61  ;;  %vm1423_vm8 = vcmp.lt.f32.partialorder %v2749_v32, %v2773_v33  ;;  %vm1424_vm10 = vcmp.lt.f32.partialorder %v2753_v41, %v2773_v33  ;;  %vm1425_vm11 = vcmp.lt.f32.partialorder %v2755_v46, %v2773_v33 }
 0x155   : > { %v2751_v53 = vpop.f32.mrb[26].mxu0  ;;  %v2761_v63 = vpop.f32.mrb[26].mxu1  ;;  %vm1418_vm4 = vcmp.lt.f32.partialorder %v2757_v3, %v2747_v28  ;;  %vm1306_vm7 = vcmp.lt.f32.partialorder %v2757_v3, %v2673_v24  ;;  %vm1426_vm14 = vcmp.lt.f32.partialorder %v2757_v3, %v2773_v33 }
 0x156   : > { %3836 = vst [vmem:[#allocation47_spill] sm:$0xff] %v2751_v53  ;;  %v2759_v6 = vpop.f32.mrb[27].mxu0  ;;  %3838 = vst [vmem:[#allocation49_spill] sm:$0xff] %v2761_v63  ;;  %v2763_v49 = vpop.f32.mrb[27].mxu1  ;;  %vm1308_vm15 = vcmp.lt.f32.partialorder %v2781_v57, %v2673_v24 }
 0x157   : > { %3837 = vst [vmem:[#allocation48_spill] sm:$0xff] %v2759_v6  ;;  %3839 = vst [vmem:[#allocation50_spill] sm:$0xff] %v2763_v49 }
 0x159   : > { %v359_v35 = vpop.f32.mrb[28].mxu0  ;;  %v520_v63 = vpop.f32.mrb[28].mxu1 }
 0x15a   : > { %v2791_v38 = vsel %vm1415_vm0, %v359_v35, -inf  ;;  %v361_v49 = vpop.f32.mrb[29].mxu0  ;;  %v2795_v28 = vsel %vm1417_vm2, %v520_v63, -inf  ;;  %v522_v61 = vpop.f32.mrb[29].mxu1  ;;  %vm1310_vm0 = vcmp.lt.f32.partialorder %v2783_v1, %v2673_v24  ;;  %vm1319_vm2 = vcmp.lt.f32.partialorder %v2749_v32, %v2675_v25 }
 0x15b   : > { %3841 = vst [vmem:[#allocation52_spill] sm:$0xff] %v2791_v38  ;;  %v2793_v6 = vsel %vm1416_vm1, %v361_v49, -inf  ;;  %3843 = vst [vmem:[#allocation54_spill] sm:$0xff] %v2795_v28  ;;  %v2801_v37 = vsel %vm1418_vm4, %v522_v61, -inf  ;;  %vm1327_vm4 = vcmp.lt.f32.partialorder %v2749_v32, %v2685_v31  ;;  %vm1325_vm1 = vcmp.lt.f32.partialorder %v2775_v34, %v2675_v25 }
 0x15c   : > { %3842 = vst [vmem:[#allocation53_spill] sm:$0xff] %v2793_v6  ;;  %3844 = vst [vmem:[#allocation55_spill] sm:$0xff] %v2801_v37 }
 0x15d   : > { %v365_v49 = vpop.f32.mrb[30].mxu0  ;;  %v526_v61 = vpop.f32.mrb[30].mxu1 }
 0x15e   : > { %v2823_v63 = vsel %vm1423_vm8, %v365_v49, -inf  ;;  %v367_v35 = vpop.f32.mrb[31].mxu0  ;;  %v2827_v37 = vsel %vm1425_vm11, %v526_v61, -inf  ;;  %v528_v6 = vpop.f32.mrb[31].mxu1  ;;  %vm1316_vm8 = vcmp.lt.f32.partialorder %v2781_v57, %v2655_v14  ;;  %vm1320_vm11 = vcmp.lt.f32.partialorder %v2753_v41, %v2675_v25 }
 0x15f   : > { %3845 = vst [vmem:[#allocation56_spill] sm:$0xff] %v2823_v63  ;;  %v2825_v33 = vsel %vm1424_vm10, %v367_v35, -inf  ;;  %3847 = vst [vmem:[#allocation58_spill] sm:$0xff] %v2827_v37  ;;  %v2835_v28 = vsel %vm1426_vm14, %v528_v6, -inf  ;;  %vm1318_vm10 = vcmp.lt.f32.partialorder %v2783_v1, %v2655_v14  ;;  %vm1323_vm14 = vcmp.lt.f32.partialorder %v2767_v0, %v2675_v25 }
 0x160   : > { %3846 = vst [vmem:[#allocation57_spill] sm:$0xff] %v2825_v33  ;;  %3848 = vst [vmem:[#allocation59_spill] sm:$0xff] %v2835_v28  ;;  %v1431_v6 = vsel %vm1303_vm3, %v2603_v39, -inf  ;;  %v1432_v35 = vsel %vm1304_vm5, %v2605_v40, -inf  ;;  %v1433_v39 = vsel %vm1305_vm6, %v2607_v47, -inf  ;;  %vm1328_vm3 = vcmp.lt.f32.partialorder %v2753_v41, %v2685_v31 }
 0x161   : > { %v597_v49 = vpop.f32.mrb[32].mxu0  ;;  %v758_v28 = vpop.f32.mrb[32].mxu1  ;;  %vm1329_vm5 = vcmp.lt.f32.partialorder %v2755_v46, %v2685_v31  ;;  %v1434_v47 = vsel %vm1306_vm7, %v2611_v50, -inf  ;;  %vm1335_vm7 = vcmp.lt.f32.partialorder %v2749_v32, %v2687_v42  ;;  %vm3853_vm6 = vcmp.lt.f32.partialorder %v2757_v3, %v2655_v14 }
 0x162   : > { %v1435_v61 = vsel %vm1307_vm9, %v597_v49, -inf  ;;  %v599_v33 = vpop.f32.mrb[33].mxu0  ;;  %v1437_v49 = vsel %vm1309_vm12, %v758_v28, -inf  ;;  %v760_v63 = vpop.f32.mrb[33].mxu1  ;;  %vm1326_vm9 = vcmp.lt.f32.partialorder %v2783_v1, %v2675_v25  ;;  %vm3850_vm12 = vcmp.lt.f32.partialorder %v2753_v41, %v2655_v14 }
 0x163   : > { %v1559_v40 = vmax.f32 %v1431_v6, %v1435_v61  ;;  %v1436_v37 = vsel %vm1308_vm15, %v599_v33, -inf  ;;  %v1561_v38 = vmax.f32 %v1433_v39, %v1437_v49  ;;  %v1438_v6 = vsel %vm1310_vm0, %v760_v63, -inf }
 0x164   : > { %v1560_v53 = vmax.f32 %v1432_v35, %v1436_v37  ;;  %vm3849_vm15 = vcmp.lt.f32.partialorder %v2749_v32, %v2655_v14  ;;  %v1562_v50 = vmax.f32 %v1434_v47, %v1438_v6  ;;  %vm1324_vm0 = vcmp.lt.f32.partialorder %v2781_v57, %v2675_v25 }
 0x165   : > { %v1439_v28 = vsel %vm3849_vm15, %v2613_v51, -inf  ;;  %v603_v33 = vpop.f32.mrb[34].mxu0  ;;  %v1440_v24 = vsel %vm3850_vm12, %v2615_v52, -inf  ;;  %vm3851_vm15 = vcmp.lt.f32.partialorder %v2755_v46, %v2655_v14  ;;  %v1623_v37 = vmax.f32 %v1559_v40, %v1561_v38  ;;  %v764_v35 = vpop.f32.mrb[34].mxu1 }
 0x166   : > { %v1441_v51 = vsel %vm3851_vm15, %v2617_v54, -inf  ;;  %v1443_v63 = vsel %vm1315_vm13, %v603_v33, -inf  ;;  %v605_v61 = vpop.f32.mrb[35].mxu0  ;;  %vm1337_vm12 = vcmp.lt.f32.partialorder %v2755_v46, %v2687_v42  ;;  %v1624_v52 = vmax.f32 %v1560_v53, %v1562_v50  ;;  %v766_v40 = vpop.f32.mrb[35].mxu1 }
 0x167   : > { %v1563_v39 = vmax.f32 %v1439_v28, %v1443_v63  ;;  %vm3852_vm15 = vcmp.lt.f32.partialorder %v2775_v34, %v2655_v14  ;;  %v1444_v38 = vsel %vm1316_vm8, %v605_v61, -inf  ;;  %vm1339_vm13 = vcmp.lt.f32.partialorder %v2767_v0, %v2687_v42 }
 0x168   : > { %v1445_v54 = vsel %vm3852_vm15, %v764_v35, -inf  ;;  %v1442_v49 = vsel %vm3853_vm6, %v2621_v56, -inf  ;;  %v1564_v53 = vmax.f32 %v1440_v24, %v1444_v38  ;;  %v1446_v6 = vsel %vm1318_vm10, %v766_v40, -inf }
 0x169   : > { %v1565_v47 = vmax.f32 %v1441_v51, %v1445_v54  ;;  %vm1341_vm15 = vcmp.lt.f32.partialorder %v2775_v34, %v2687_v42  ;;  %v1447_v28 = vsel %vm1319_vm2, %v2625_v58, -inf  ;;  %vm1338_vm8 = vcmp.lt.f32.partialorder %v2757_v3, %v2687_v42  ;;  %v609_v33 = vpop.f32.mrb[36].mxu0 }
 0x16a   : > { %v1566_v50 = vmax.f32 %v1442_v49, %v1446_v6  ;;  %v2943_v56 = vmax.f32 %v1623_v37, %v1624_v52  ;;  %v1448_v14 = vsel %vm1320_vm11, %v2627_v59, -inf  ;;  %vm3854_vm10 = vcmp.lt.f32.partialorder %v2755_v46, %v2675_v25  ;;  %v770_v37 = vpop.f32.mrb[36].mxu1  ;;  %v611_v63 = vpop.f32.mrb[37].mxu0 }
 0x16b   : > { %v1449_v58 = vsel %vm3854_vm10, %v2629_v60, -inf  ;;  %vm1343_vm2 = vcmp.lt.f32.partialorder %v2749_v32, %v2697_v9  ;;  %v1625_v24 = vmax.f32 %v1563_v39, %v1565_v47  ;;  %v1451_v51 = vsel %vm1323_vm14, %v609_v33, -inf  ;;  %v772_v61 = vpop.f32.mrb[37].mxu1 }
 0x16c   : > { %vm1344_vm6 = vcmp.lt.f32.partialorder %v2753_v41, %v2697_v9  ;;  %vm1345_vm11 = vcmp.lt.f32.partialorder %v2755_v46, %v2697_v9  ;;  %v1626_v59 = vmax.f32 %v1564_v53, %v1566_v50  ;;  %v1567_v35 = vmax.f32 %v1447_v28, %v1451_v51  ;;  %1671 = vrot.lane.b32.xlu1 %v2943_v56, %s2266_s10 }
 0x16d   : > { %v1453_v60 = vsel %vm1325_vm1, %v770_v37, -inf  ;;  %v1452_v52 = vsel %vm1324_vm0, %v611_v63, -inf  ;;  %vm1347_vm14 = vcmp.lt.f32.partialorder %v2767_v0, %v2697_v9  ;;  %vm3855_vm10 = vcmp.lt.f32.partialorder %v2757_v3, %v2675_v25  ;;  %v615_v47 = vpop.f32.mrb[38].mxu0  ;;  %v776_v50 = vpop.f32.mrb[38].mxu1 }
 0x16e   : > { %v1450_v39 = vsel %vm3855_vm10, %v2631_v62, -inf  ;;  %v1569_v54 = vmax.f32 %v1449_v58, %v1453_v60  ;;  %v1454_v38 = vsel %vm1326_vm9, %v772_v61, -inf  ;;  %v1568_v40 = vmax.f32 %v1448_v14, %v1452_v52  ;;  %v617_v33 = vpop.f32.mrb[39].mxu0  ;;  %v778_v58 = vpop.f32.mrb[39].mxu1 }
 0x16f   : > { %vm1348_vm0 = vcmp.lt.f32.partialorder %v2781_v57, %v2697_v9  ;;  %v1455_v49 = vsel %vm1327_vm4, %v2635_v2, -inf  ;;  %v1570_v62 = vmax.f32 %v1450_v39, %v1454_v38  ;;  %v2991_v53 = vmax.f32 %v1625_v24, %v1626_v59 }
 0x170   : > { %vm1340_vm9 = vcmp.lt.f32.partialorder %v2781_v57, %v2687_v42  ;;  %v1456_v25 = vsel %vm1328_vm3, %v2637_v4, -inf  ;;  %v1457_v2 = vsel %vm1329_vm5, %v2639_v5, -inf  ;;  %v1627_v6 = vmax.f32 %v1567_v35, %v1569_v54 }
 0x171   : > { %vm3856_vm10 = vcmp.lt.f32.partialorder %v2767_v0, %v2685_v31  ;;  %v1628_v4 = vmax.f32 %v1568_v40, %v1570_v62  ;;  %vm3857_vm5 = vcmp.lt.f32.partialorder %v2775_v34, %v2685_v31  ;;  %1673 = vrot.lane.b32.xlu0 %v2991_v53, %s2266_s10  ;;  %vm1355_vm1 = vcmp.lt.f32.partialorder %v2767_v0, %v2699_v23  ;;  %v621_v61 = vpop.f32.mrb[40].mxu0  ;;  %v782_v54 = vpop.f32.mrb[40].mxu1 }
 0x172   : > { %v1459_v28 = vsel %vm3856_vm10, %v615_v47, -inf  ;;  %v1461_v5 = vsel %vm3857_vm5, %v776_v50, -inf  ;;  %vm3858_vm10 = vcmp.lt.f32.partialorder %v2781_v57, %v2685_v31  ;;  %vm3859_vm3 = vcmp.lt.f32.partialorder %v2757_v3, %v2685_v31  ;;  %v623_v38 = vpop.f32.mrb[41].mxu0 }
 0x173   : > { %v1571_v14 = vmax.f32 %v1455_v49, %v1459_v28  ;;  %v1460_v24 = vsel %vm3858_vm10, %v617_v33, -inf  ;;  %v1458_v51 = vsel %vm3859_vm3, %v2643_v7, -inf  ;;  %v1573_v37 = vmax.f32 %v1457_v2, %v1461_v5  ;;  %v784_v49 = vpop.f32.mrb[41].mxu1 }
 0x174   : > { %vm3860_vm5 = vcmp.lt.f32.partialorder %v2783_v1, %v2685_v31  ;;  %v1572_v59 = vmax.f32 %v1456_v25, %v1460_v24  ;;  %vm1357_vm4 = vcmp.lt.f32.partialorder %v2775_v34, %v2699_v23  ;;  %v1463_v35 = vsel %vm1335_vm7, %v2645_v8, -inf }
 0x175   : > { %v1462_v63 = vsel %vm3860_vm5, %v778_v58, -inf  ;;  %vm1354_vm10 = vcmp.lt.f32.partialorder %v2757_v3, %v2699_v23  ;;  %v3039_v7 = vmax.f32 %v1627_v6, %v1628_v4  ;;  %vm3861_vm5 = vcmp.lt.f32.partialorder %v2753_v41, %v2687_v42  ;;  %v627_v50 = vpop.f32.mrb[42].mxu0  ;;  %v788_v5 = vpop.f32.mrb[42].mxu1 }
 0x176   : > { %v1574_v60 = vmax.f32 %v1458_v51, %v1462_v63  ;;  %v1464_v31 = vsel %vm3861_vm5, %v2647_v10, -inf  ;;  %v1465_v8 = vsel %vm1337_vm12, %v2649_v11, -inf  ;;  %vm1359_vm7 = vcmp.lt.f32.partialorder %v2749_v32, %v2709_v13  ;;  %v629_v58 = vpop.f32.mrb[43].mxu0  ;;  %v790_v51 = vpop.f32.mrb[43].mxu1 }
 0x177   : > { %v1629_v52 = vmax.f32 %v1571_v14, %v1573_v37  ;;  %v1467_v39 = vsel %vm1339_vm13, %v621_v61, -inf  ;;  %vm1360_vm3 = vcmp.lt.f32.partialorder %v2753_v41, %v2709_v13  ;;  %vm1361_vm5 = vcmp.lt.f32.partialorder %v2755_v46, %v2709_v13  ;;  %1675 = vrot.lane.b32.xlu1 %v3039_v7, %s2266_s10 }
 0x178   : > { %v1630_v10 = vmax.f32 %v1572_v59, %v1574_v60  ;;  %v1575_v40 = vmax.f32 %v1463_v35, %v1467_v39  ;;  %v1469_v11 = vsel %vm1341_vm15, %v782_v54, -inf  ;;  %v1468_v62 = vsel %vm1340_vm9, %v623_v38, -inf }
 0x179   : > { %vm1363_vm12 = vcmp.lt.f32.partialorder %v2767_v0, %v2709_v13  ;;  %v1466_v47 = vsel %vm1338_vm8, %v2651_v12, -inf  ;;  %v1577_v25 = vmax.f32 %v1465_v8, %v1469_v11  ;;  %vm3862_vm13 = vcmp.lt.f32.partialorder %v2783_v1, %v2687_v42  ;;  %v633_v8 = vpop.f32.mrb[44].mxu0  ;;  %v794_v54 = vpop.f32.mrb[44].mxu1 }
 0x17a   : > { %v1470_v2 = vsel %vm3862_vm13, %v784_v49, -inf  ;;  %v1576_v6 = vmax.f32 %v1464_v31, %v1468_v62  ;;  %vm1364_vm9 = vcmp.lt.f32.partialorder %v2781_v57, %v2709_v13  ;;  %v1471_v28 = vsel %vm1343_vm2, %v2657_v15, -inf  ;;  %v635_v38 = vpop.f32.mrb[45].mxu0 }
 0x17b   : > { %vm1362_vm8 = vcmp.lt.f32.partialorder %v2757_v3, %v2709_v13  ;;  %v1578_v12 = vmax.f32 %v1466_v47, %v1470_v2  ;;  %v3087_v33 = vmax.f32 %v1629_v52, %v1630_v10  ;;  %vm1356_vm13 = vcmp.lt.f32.partialorder %v2781_v57, %v2699_v23 }
 0x17c   : > { %v1472_v42 = vsel %vm1344_vm6, %v2659_v16, -inf  ;;  %v1473_v15 = vsel %vm1345_vm11, %v2661_v17, -inf  ;;  %vm1367_vm2 = vcmp.lt.f32.partialorder %v2749_v32, %v2711_v36  ;;  %v1631_v4 = vmax.f32 %v1575_v40, %v1577_v25  ;;  %v796_v40 = vpop.f32.mrb[45].mxu1 }
 0x17d   : > { %v1475_v14 = vsel %vm1347_vm14, %v627_v50, -inf  ;;  %v1632_v16 = vmax.f32 %v1576_v6, %v1578_v12  ;;  %vm3863_vm11 = vcmp.lt.f32.partialorder %v2775_v34, %v2697_v9  ;;  %1677 = vrot.lane.b32.xlu0 %v3087_v33, %s2266_s10  ;;  %v1476_v37 = vsel %vm1348_vm0, %v629_v58, -inf }
 0x17e   : > { %v1579_v24 = vmax.f32 %v1471_v28, %v1475_v14  ;;  %v1477_v17 = vsel %vm3863_vm11, %v788_v5, -inf  ;;  %vm3864_vm14 = vcmp.lt.f32.partialorder %v2757_v3, %v2697_v9  ;;  %vm3865_vm6 = vcmp.lt.f32.partialorder %v2783_v1, %v2697_v9  ;;  %v639_v28 = vpop.f32.mrb[46].mxu0 }
 0x17f   : > { %v1474_v63 = vsel %vm3864_vm14, %v2663_v18, -inf  ;;  %v1581_v59 = vmax.f32 %v1473_v15, %v1477_v17  ;;  %v1478_v35 = vsel %vm3865_vm6, %v790_v51, -inf  ;;  %v1580_v60 = vmax.f32 %v1472_v42, %v1476_v37  ;;  %v800_v42 = vpop.f32.mrb[46].mxu1  ;;  %v641_v15 = vpop.f32.mrb[47].mxu0 }
 0x180   : > { %vm3866_vm11 = vcmp.lt.f32.partialorder %v2749_v32, %v2699_v23  ;;  %v1582_v31 = vmax.f32 %v1474_v63, %v1478_v35  ;;  %v3131_v52 = vmax.f32 %v1631_v4, %v1632_v16  ;;  %vm3867_vm6 = vcmp.lt.f32.partialorder %v2753_v41, %v2699_v23  ;;  %v802_v14 = vpop.f32.mrb[47].mxu1 }
 0x181   : > { %v1479_v61 = vsel %vm3866_vm11, %v2665_v19, -inf  ;;  %v1480_v18 = vsel %vm3867_vm6, %v2667_v20, -inf  ;;  %vm3868_vm14 = vcmp.lt.f32.partialorder %v2755_v46, %v2699_v23  ;;  %vm1375_vm11 = vcmp.lt.f32.partialorder %v2749_v32, %v2721_v55  ;;  %v645_v63 = vpop.f32.mrb[48].mxu0 }
 0x182   : > { %v1481_v19 = vsel %vm3868_vm14, %v2669_v21, -inf  ;;  %v1633_v9 = vmax.f32 %v1579_v24, %v1581_v59  ;;  %v1483_v39 = vsel %vm1355_vm1, %v633_v8, -inf  ;;  %vm1373_vm15 = vcmp.lt.f32.partialorder %v2775_v34, %v2711_v36  ;;  %1679 = vrot.lane.b32.xlu1 %v3131_v52, %s2266_s10 }
 0x183   : > { %vm1372_vm6 = vcmp.lt.f32.partialorder %v2781_v57, %v2711_v36  ;;  %vm1376_vm0 = vcmp.lt.f32.partialorder %v2753_v41, %v2721_v55  ;;  %vm1377_vm14 = vcmp.lt.f32.partialorder %v2755_v46, %v2721_v55  ;;  %v1634_v20 = vmax.f32 %v1580_v60, %v1582_v31  ;;  %v647_v31 = vpop.f32.mrb[49].mxu0 }
 0x184   : > { %v1583_v21 = vmax.f32 %v1479_v61, %v1483_v39  ;;  %v1485_v10 = vsel %vm1357_vm4, %v794_v54, -inf  ;;  %v1484_v11 = vsel %vm1356_vm13, %v635_v38, -inf  ;;  %vm1374_vm1 = vcmp.lt.f32.partialorder %v2783_v1, %v2711_v36  ;;  %v806_v61 = vpop.f32.mrb[48].mxu1 }
 0x185   : > { %v1482_v49 = vsel %vm1354_vm10, %v2671_v22, -inf  ;;  %v1585_v62 = vmax.f32 %v1481_v19, %v1485_v10  ;;  %vm3869_vm4 = vcmp.lt.f32.partialorder %v2783_v1, %v2699_v23  ;;  %v1584_v25 = vmax.f32 %v1480_v18, %v1484_v11  ;;  %v808_v18 = vpop.f32.mrb[49].mxu1  ;;  %v651_v11 = vpop.f32.mrb[50].mxu0 }
 0x186   : > { %v1486_v47 = vsel %vm3869_vm4, %v796_v40, -inf  ;;  %v1487_v2 = vsel %vm1359_vm7, %v2677_v26, -inf  ;;  %v3179_v12 = vmax.f32 %v1633_v9, %v1634_v20  ;;  %vm1379_vm10 = vcmp.lt.f32.partialorder %v2767_v0, %v2721_v55  ;;  %v3877_v9 = vld [vmem:[#allocation26_spill] sm:$0xff] }
 0x187   : > { %v1586_v6 = vmax.f32 %v1482_v49, %v1486_v47  ;;  %v1488_v22 = vsel %vm1360_vm3, %v2679_v27, -inf  ;;  %v1489_v26 = vsel %vm1361_vm5, %v2681_v29, -inf  ;;  %v1635_v23 = vmax.f32 %v1583_v21, %v1585_v62  ;;  %v3879_v21 = vld [vmem:[#allocation27_spill] sm:$0xff]  ;;  %v3881_v62 = vld [vmem:[#allocation28_spill] sm:$0xff]  ;;  %v3882_v47 = vld [vmem:[#allocation29_spill] sm:$0xff] }
 0x188   : > { %v1491_v50 = vsel %vm1363_vm12, %v639_v28, -inf  ;;  %vm1381_vm4 = vcmp.lt.f32.partialorder %v2775_v34, %v2721_v55  ;;  %vm1380_vm3 = vcmp.lt.f32.partialorder %v2781_v57, %v2721_v55  ;;  %vm3870_vm7 = vcmp.lt.f32.partialorder %v2775_v34, %v2709_v13  ;;  %1681 = vrot.lane.b32.xlu0 %v3179_v12, %s2266_s10 }
 0x189   : > { %v1636_v27 = vmax.f32 %v1584_v25, %v1586_v6  ;;  %v1587_v29 = vmax.f32 %v1487_v2, %v1491_v50  ;;  %v1493_v4 = vsel %vm3870_vm7, %v800_v42, -inf  ;;  %v1492_v5 = vsel %vm1364_vm9, %v641_v15, -inf  ;;  %v3883_v2 = vld [vmem:[#allocation40_spill] sm:$0xff] }
 0x18a   : > { %vm1382_vm12 = vcmp.lt.f32.partialorder %v2783_v1, %v2721_v55  ;;  %v1490_v58 = vsel %vm1362_vm8, %v2683_v30, -inf  ;;  %v1589_v16 = vmax.f32 %v1489_v26, %v1493_v4  ;;  %vm3871_vm7 = vcmp.lt.f32.partialorder %v2783_v1, %v2709_v13  ;;  %v653_v26 = vpop.f32.mrb[51].mxu0 }
 0x18b   : > { %v1494_v24 = vsel %vm3871_vm7, %v802_v14, -inf  ;;  %v1588_v17 = vmax.f32 %v1488_v22, %v1492_v5  ;;  %v1495_v51 = vsel %vm1367_vm2, %v2689_v43, -inf  ;;  %v3227_v59 = vmax.f32 %v1635_v23, %v1636_v27  ;;  %v3875_v43 = vld [vmem:[#allocation39_spill] sm:$0xff]  ;;  %v812_v22 = vpop.f32.mrb[50].mxu1 }
 0x18c   : > { %v1590_v37 = vmax.f32 %v1490_v58, %v1494_v24  ;;  %vm3873_vm7 = vcmp.lt.f32.partialorder %v2753_v41, %v2711_v36  ;;  %vm3874_vm5 = vcmp.lt.f32.partialorder %v2755_v46, %v2711_v36  ;;  %vm1391_vm2 = vcmp.lt.f32.partialorder %v2749_v32, %v3875_v43  ;;  %v814_v15 = vpop.f32.mrb[51].mxu1 }
 0x18d   : > { %3872 = vst [vmem:[#allocation60_spill] sm:$0xff] %v3227_v59  ;;  %v1496_v13 = vsel %vm3873_vm7, %v2691_v44, -inf  ;;  %v1497_v30 = vsel %vm3874_vm5, %v2693_v45, -inf  ;;  %v1637_v35 = vmax.f32 %v1587_v29, %v1589_v16  ;;  %vm3876_vm9 = vcmp.lt.f32.partialorder %v2767_v0, %v2711_v36  ;;  %1683 = vrot.lane.b32.xlu1 %v3227_v59, %s2266_s10  ;;  %v3884_v29 = vld [vmem:[#allocation30_spill] sm:$0xff]  ;;  %v3886_v16 = vld [vmem:[#allocation31_spill] sm:$0xff] }
 0x18e   : > { %v1499_v60 = vsel %vm3876_vm9, %v645_v63, -inf  ;;  %vm1389_vm8 = vcmp.lt.f32.partialorder %v2775_v34, %v2723_v48  ;;  %vm1388_vm7 = vcmp.lt.f32.partialorder %v2781_v57, %v2723_v48  ;;  %vm1392_vm13 = vcmp.lt.f32.partialorder %v2753_v41, %v3875_v43  ;;  %v3888_v63 = vld [vmem:[#allocation32_spill] sm:$0xff] }
 0x18f   : > { %v1638_v44 = vmax.f32 %v1588_v17, %v1590_v37  ;;  %v1591_v45 = vmax.f32 %v1495_v51, %v1499_v60  ;;  %v1501_v8 = vsel %vm1373_vm15, %v806_v61, -inf  ;;  %v1500_v19 = vsel %vm1372_vm6, %v647_v31, -inf  ;;  %v657_v51 = vpop.f32.mrb[52].mxu0  ;;  %v818_v31 = vpop.f32.mrb[52].mxu1 }
 0x190   : > { %vm1390_vm9 = vcmp.lt.f32.partialorder %v2783_v1, %v2723_v48  ;;  %vm3878_vm5 = vcmp.lt.f32.partialorder %v2757_v3, %v2711_v36  ;;  %v1593_v54 = vmax.f32 %v1497_v30, %v1501_v8  ;;  %v1502_v38 = vsel %vm1374_vm1, %v808_v18, -inf }
 0x191   : > { %v1498_v39 = vsel %vm3878_vm5, %v3877_v9, -inf  ;;  %v1592_v20 = vmax.f32 %v1496_v13, %v1500_v19  ;;  %v1503_v10 = vsel %vm1375_vm11, %v3879_v21, -inf  ;;  %vm1394_vm15 = vcmp.lt.f32.partialorder %v2757_v3, %v3875_v43  ;;  %v3890_v13 = vld [vmem:[#allocation33_spill] sm:$0xff]  ;;  %v820_v19 = vpop.f32.mrb[53].mxu1 }
 0x192   : > { %v1594_v40 = vmax.f32 %v1498_v39, %v1502_v38  ;;  %v3275_v49 = vmax.f32 %v1637_v35, %v1638_v44  ;;  %vm1395_vm6 = vcmp.lt.f32.partialorder %v2767_v0, %v3875_v43  ;;  %v1504_v36 = vsel %vm1376_vm0, %v3881_v62, -inf  ;;  %v3892_v35 = vld [vmem:[#allocation45_spill] sm:$0xff]  ;;  %v659_v44 = vpop.f32.mrb[53].mxu0  ;;  %v3894_v39 = vld [vmem:[#allocation34_spill] sm:$0xff] }
 0x193   : > { %v1505_v25 = vsel %vm1377_vm14, %v3882_v47, -inf  ;;  %v1639_v6 = vmax.f32 %v1591_v45, %v1593_v54  ;;  %v1507_v28 = vsel %vm1379_vm10, %v651_v11, -inf  ;;  %vm1397_vm1 = vcmp.lt.f32.partialorder %v2775_v34, %v3875_v43  ;;  %v663_v62 = vpop.f32.mrb[54].mxu0  ;;  %v3897_v47 = vld [vmem:[#allocation36_spill] sm:$0xff] }
 0x194   : > { %3880 = vst [vmem:[#allocation39_spill] sm:$0xff] %v3275_v49  ;;  %vm1396_vm0 = vcmp.lt.f32.partialorder %v2781_v57, %v3875_v43  ;;  %v1640_v23 = vmax.f32 %v1592_v20, %v1594_v40  ;;  %v1595_v50 = vmax.f32 %v1503_v10, %v1507_v28  ;;  %v1509_v42 = vsel %vm1381_vm4, %v812_v22, -inf  ;;  %1685 = vrot.lane.b32.xlu0 %v3275_v49, %s2266_s10  ;;  %v3896_v10 = vld [vmem:[#allocation35_spill] sm:$0xff] }
 0x195   : > { %v1508_v27 = vsel %vm1380_vm3, %v653_v26, -inf  ;;  %vm1398_vm10 = vcmp.lt.f32.partialorder %v2783_v1, %v3875_v43  ;;  %vm3885_vm14 = vcmp.lt.f32.partialorder %v2757_v3, %v2721_v55  ;;  %v1597_v14 = vmax.f32 %v1505_v25, %v1509_v42  ;;  %v3898_v25 = vld [vmem:[#allocation37_spill] sm:$0xff]  ;;  %v824_v26 = vpop.f32.mrb[54].mxu1 }
 0x196   : > { %v1506_v4 = vsel %vm3885_vm14, %v3884_v29, -inf  ;;  %v1510_v5 = vsel %vm1382_vm12, %v814_v15, -inf  ;;  %v1596_v58 = vmax.f32 %v1504_v36, %v1508_v27  ;;  %vm3887_vm4 = vcmp.lt.f32.partialorder %v2749_v32, %v2723_v48  ;;  %v826_v27 = vpop.f32.mrb[55].mxu1 }
 0x197   : > { %v1511_v24 = vsel %vm3887_vm4, %v3886_v16, -inf  ;;  %v1598_v17 = vmax.f32 %v1506_v4, %v1510_v5  ;;  %v3323_v37 = vmax.f32 %v1639_v6, %v1640_v23  ;;  %vm3889_vm12 = vcmp.lt.f32.partialorder %v2753_v41, %v2723_v48  ;;  %v665_v23 = vpop.f32.mrb[55].mxu0  ;;  %v3900_v4 = vld [vmem:[#allocation38_spill] sm:$0xff] }
 0x198   : > { %v1512_v55 = vsel %vm3889_vm12, %v3888_v63, -inf  ;;  %vm3891_vm5 = vcmp.lt.f32.partialorder %v2755_v46, %v2723_v48  ;;  %vm1407_vm4 = vcmp.lt.f32.partialorder %v2749_v32, %v3892_v35  ;;  %v1641_v60 = vmax.f32 %v1595_v50, %v1597_v14  ;;  %v669_v63 = vpop.f32.mrb[56].mxu0 }
 0x199   : > { %v1513_v30 = vsel %vm3891_vm5, %v3890_v13, -inf  ;;  %vm3893_vm3 = vcmp.lt.f32.partialorder %v2767_v0, %v2723_v48  ;;  %vm1405_vm14 = vcmp.lt.f32.partialorder %v2775_v34, %v3883_v2  ;;  %vm1404_vm12 = vcmp.lt.f32.partialorder %v2781_v57, %v3883_v2  ;;  %1687 = vrot.lane.b32.xlu1 %v3323_v37, %s2266_s10  ;;  %v3903_v13 = vld [vmem:[#allocation42_spill] sm:$0xff] }
 0x19a   : > { %v1515_v61 = vsel %vm3893_vm3, %v657_v51, -inf  ;;  %vm1408_vm11 = vcmp.lt.f32.partialorder %v2753_v41, %v3892_v35  ;;  %v1642_v45 = vmax.f32 %v1596_v58, %v1598_v17  ;;  %v1517_v18 = vsel %vm1389_vm8, %v818_v31, -inf }
 0x19b   : > { %v1599_v8 = vmax.f32 %v1511_v24, %v1515_v61  ;;  %v1516_v9 = vsel %vm1388_vm7, %v659_v44, -inf  ;;  %vm1406_vm3 = vcmp.lt.f32.partialorder %v2783_v1, %v3883_v2  ;;  %vm3895_vm5 = vcmp.lt.f32.partialorder %v2757_v3, %v2723_v48  ;;  %v3901_v24 = vld [vmem:[#allocation41_spill] sm:$0xff]  ;;  %v830_v44 = vpop.f32.mrb[56].mxu1 }
 0x19c   : > { %v1514_v54 = vsel %vm3895_vm5, %v3894_v39, -inf  ;;  %v1601_v38 = vmax.f32 %v1513_v30, %v1517_v18  ;;  %v1518_v20 = vsel %vm1390_vm9, %v820_v19, -inf  ;;  %v1600_v21 = vmax.f32 %v1512_v55, %v1516_v9  ;;  %v832_v9 = vpop.f32.mrb[57].mxu1 }
 0x19d   : > { %v1519_v40 = vsel %vm1391_vm2, %v3896_v10, -inf  ;;  %vm1410_vm8 = vcmp.lt.f32.partialorder %v2757_v3, %v3892_v35  ;;  %v1602_v11 = vmax.f32 %v1514_v54, %v1518_v20  ;;  %v3371_v36 = vmax.f32 %v1641_v60, %v1642_v45  ;;  %v671_v45 = vpop.f32.mrb[57].mxu0  ;;  %v3908_v54 = vld [vmem:[#allocation44_spill] sm:$0xff] }
 0x19e   : > { %vm1411_vm7 = vcmp.lt.f32.partialorder %v2767_v0, %v3892_v35  ;;  %v1520_v48 = vsel %vm1392_vm13, %v3897_v47, -inf  ;;  %vm3899_vm9 = vcmp.lt.f32.partialorder %v2755_v46, %v3875_v43  ;;  %v1643_v28 = vmax.f32 %v1599_v8, %v1601_v38  ;;  %v3905_v43 = vld [vmem:[#allocation43_spill] sm:$0xff]  ;;  %v675_v47 = vpop.f32.mrb[58].mxu0 }
 0x19f   : > { %v1521_v6 = vsel %vm3899_vm9, %v3898_v25, -inf  ;;  %v1523_v22 = vsel %vm1395_vm6, %v663_v62, -inf  ;;  %vm1413_vm2 = vcmp.lt.f32.partialorder %v2775_v34, %v3892_v35  ;;  %v1644_v50 = vmax.f32 %v1600_v21, %v1602_v11  ;;  %1689 = vrot.lane.b32.xlu0 %v3371_v36, %s2266_s10  ;;  %v3911_v25 = vld [vmem:[#allocation48_spill] sm:$0xff] }
 0x1a0   : > { %v1603_v42 = vmax.f32 %v1519_v40, %v1523_v22  ;;  %v1525_v15 = vsel %vm1397_vm1, %v824_v26, -inf  ;;  %v1524_v29 = vsel %vm1396_vm0, %v665_v23, -inf  ;;  %v1522_v14 = vsel %vm1394_vm15, %v3900_v4, -inf  ;;  %v3910_v40 = vld [vmem:[#allocation47_spill] sm:$0xff]  ;;  %v836_v26 = vpop.f32.mrb[58].mxu1  ;;  %v677_v23 = vpop.f32.mrb[59].mxu0 }
 0x1a1   : > { %v1605_v5 = vmax.f32 %v1521_v6, %v1525_v15  ;;  %v1526_v58 = vsel %vm1398_vm10, %v826_v27, -inf  ;;  %v1604_v16 = vmax.f32 %v1520_v48, %v1524_v29  ;;  %vm3902_vm13 = vcmp.lt.f32.partialorder %v2749_v32, %v3883_v2 }
 0x1a2   : > { %v1527_v17 = vsel %vm3902_vm13, %v3901_v24, -inf  ;;  %v1606_v51 = vmax.f32 %v1522_v14, %v1526_v58  ;;  %v3407_v55 = vmax.f32 %v1643_v28, %v1644_v50  ;;  %vm1414_vm6 = vcmp.lt.f32.partialorder %v2783_v1, %v3892_v35  ;;  %v3915_v24 = vld [vmem:[#allocation46_spill] sm:$0xff] }
 0x1a3   : > { %vm3904_vm15 = vcmp.lt.f32.partialorder %v2753_v41, %v3883_v2  ;;  %vm3906_vm1 = vcmp.lt.f32.partialorder %v2755_v46, %v3883_v2  ;;  %v1645_v61 = vmax.f32 %v1603_v42, %v1605_v5  ;;  %vm3907_vm0 = vcmp.lt.f32.partialorder %v2767_v0, %v3883_v2  ;;  %v838_v41 = vpop.f32.mrb[59].mxu1 }
 0x1a4   : > { %v1528_v30 = vsel %vm3904_vm15, %v3903_v13, -inf  ;;  %v1529_v60 = vsel %vm3906_vm1, %v3905_v43, -inf  ;;  %v1531_v31 = vsel %vm3907_vm0, %v669_v63, -inf  ;;  %v1646_v8 = vmax.f32 %v1604_v16, %v1606_v51  ;;  %1691 = vrot.lane.b32.xlu1 %v3407_v55, %s2266_s10  ;;  %v681_v16 = vpop.f32.mrb[60].mxu0 }
 0x1a5   : > { %v1607_v18 = vmax.f32 %v1527_v17, %v1531_v31  ;;  %v1533_v19 = vsel %vm1405_vm14, %v830_v44, -inf  ;;  %v1532_v39 = vsel %vm1404_vm12, %v671_v45, -inf  ;;  %vm3909_vm10 = vcmp.lt.f32.partialorder %v2757_v3, %v3883_v2  ;;  %v3912_v2 = vld [vmem:[#allocation49_spill] sm:$0xff]  ;;  %v842_v3 = vpop.f32.mrb[60].mxu1  ;;  %v683_v13 = vpop.f32.mrb[61].mxu0  ;;  %v3917_v44 = vld [vmem:[#allocation54_spill] sm:$0xff] }
 0x1a6   : > { %v1530_v38 = vsel %vm3909_vm10, %v3908_v54, -inf  ;;  %v1609_v20 = vmax.f32 %v1529_v60, %v1533_v19  ;;  %v1534_v21 = vsel %vm1406_vm3, %v832_v9, -inf  ;;  %v1608_v10 = vmax.f32 %v1528_v30, %v1532_v39  ;;  %v3916_v30 = vld [vmem:[#allocation52_spill] sm:$0xff]  ;;  %v3919_v9 = vld [vmem:[#allocation55_spill] sm:$0xff]  ;;  %v687_v54 = vpop.f32.mrb[62].mxu0 }
 0x1a7   : > { %v1535_v11 = vsel %vm1407_vm4, %v3910_v40, -inf  ;;  %v1610_v62 = vmax.f32 %v1530_v38, %v1534_v21  ;;  %v3441_v48 = vmax.f32 %v1645_v61, %v1646_v8  ;;  %vm1412_vm14 = vcmp.lt.f32.partialorder %v2781_v57, %v3892_v35  ;;  %v844_v61 = vpop.f32.mrb[61].mxu1  ;;  %v3920_v38 = vld [vmem:[#allocation51_spill] sm:$0xff] }
 0x1a8   : > { %v1536_v6 = vsel %vm1408_vm11, %v3911_v25, -inf  ;;  %vm3913_vm12 = vcmp.lt.f32.partialorder %v2755_v46, %v3892_v35  ;;  %v1647_v22 = vmax.f32 %v1607_v18, %v1609_v20  ;;  %v1539_v32 = vsel %vm1411_vm7, %v675_v47, -inf  ;;  %v3914_v46 = vld [vmem:[#allocation50_spill] sm:$0xff]  ;;  %v3918_v18 = vld [vmem:[#allocation53_spill] sm:$0xff]  ;;  %v848_v40 = vpop.f32.mrb[62].mxu1  ;;  %v3921_v47 = vld [vmem:[#allocation56_spill] sm:$0xff] }
 0x1a9   : > { %v1537_v28 = vsel %vm3913_vm12, %v3912_v2, -inf  ;;  %v1648_v50 = vmax.f32 %v1608_v10, %v1610_v62  ;;  %v1611_v42 = vmax.f32 %v1535_v11, %v1539_v32  ;;  %v1541_v15 = vsel %vm1413_vm2, %v836_v26, -inf  ;;  %1693 = vrot.lane.b32.xlu0 %v3441_v48, %s2266_s10  ;;  %v689_v11 = vpop.f32.mrb[63].mxu0  ;;  %v3922_v2 = vld [vmem:[#allocation58_spill] sm:$0xff]  ;;  %v3923_v32 = vld [vmem:[#allocation57_spill] sm:$0xff] }
 0x1aa   : > { %v1540_v27 = vsel %vm1412_vm14, %v677_v23, -inf  ;;  %v1538_v29 = vsel %vm1410_vm8, %v3914_v46, -inf  ;;  %v1613_v4 = vmax.f32 %v1537_v28, %v1541_v15  ;;  %v1542_v14 = vsel %vm1414_vm6, %v838_v41, -inf  ;;  %v3924_v23 = vld [vmem:[#allocation59_spill] sm:$0xff] }
 0x1ab   : > { %v1612_v5 = vmax.f32 %v1536_v6, %v1540_v27  ;;  %v1614_v58 = vmax.f32 %v1538_v29, %v1542_v14  ;;  %vm1419_vm11 = vcmp.lt.f32.partialorder %v2767_v0, %v3915_v24  ;;  %vm1421_vm4 = vcmp.lt.f32.partialorder %v2775_v34, %v3915_v24 }
 0x1ac   : > { %v3472_v17 = vmax.f32 %v1647_v22, %v1648_v50  ;;  %v1649_v51 = vmax.f32 %v1611_v42, %v1613_v4  ;;  %v1547_v63 = vsel %vm1419_vm11, %v681_v16, -inf  ;;  %vm1422_vm5 = vcmp.lt.f32.partialorder %v2783_v1, %v3915_v24  ;;  %v3500_v50 = vpop.f32.mrb[64].mxu0 }
 0x1ad   : > { %vm1420_vm3 = vcmp.lt.f32.partialorder %v2781_v57, %v3915_v24  ;;  %v1650_v35 = vmax.f32 %v1612_v5, %v1614_v58  ;;  %v1615_v43 = vmax.f32 %v3916_v30, %v1547_v63  ;;  %v1549_v60 = vsel %vm1421_vm4, %v842_v3, -inf  ;;  %v919_v41 = vpop.f32.mrb[65].mxu0 }
 0x1ae   : > { %1695 = vrot.lane.b32.xlu1 %v3472_v17, %s2266_s10  ;;  %v1548_v31 = vsel %vm1420_vm3, %v683_v13, -inf  ;;  %v1617_v45 = vmax.f32 %v3917_v44, %v1549_v60  ;;  %v1550_v8 = vsel %vm1422_vm5, %v844_v61, -inf  ;;  %vm1427_vm8 = vcmp.lt.f32.partialorder %v2767_v0, %v3920_v38  ;;  %v850_v0 = vpop.f32.mrb[63].mxu1  ;;  %v3511_v29 = vpop.f32.mrb[66].mxu0 }
 0x1af   : > { %v1616_v19 = vmax.f32 %v3918_v18, %v1548_v31  ;;  %v1618_v39 = vmax.f32 %v3919_v9, %v1550_v8  ;;  %vm1429_vm7 = vcmp.lt.f32.partialorder %v2775_v34, %v3920_v38  ;;  %v3488_v20 = vmax.f32 %v1649_v51, %v1650_v35  ;;  %v3504_v15 = vpop.f32.mrb[64].mxu1  ;;  %v3519_v5 = vpop.f32.mrb[67].mxu0 }
 0x1b0   : > { %v1651_v21 = vmax.f32 %v1615_v43, %v1617_v45  ;;  %v1555_v10 = vsel %vm1427_vm8, %v687_v54, -inf  ;;  %vm1430_vm9 = vcmp.lt.f32.partialorder %v2783_v1, %v3920_v38  ;;  %vm1428_vm2 = vcmp.lt.f32.partialorder %v2781_v57, %v3920_v38  ;;  %v3508_v46 = vpop.f32.mrb[65].mxu1  ;;  %v3525_v16 = vpop.f32.mrb[68].mxu0 }
 0x1b1   : > { %v1652_v62 = vmax.f32 %v1616_v19, %v1618_v39  ;;  %v1619_v25 = vmax.f32 %v3921_v47, %v1555_v10  ;;  %v1557_v6 = vsel %vm1429_vm7, %v848_v40, -inf  ;;  %1697 = vrot.lane.b32.xlu0 %v3488_v20, %s2266_s10  ;;  %v1556_v34 = vsel %vm1428_vm2, %v689_v11, -inf  ;;  %v3515_v14 = vpop.f32.mrb[66].mxu1  ;;  %v3531_v51 = vpop.f32.mrb[69].mxu0 }
 0x1b2   : > { %v1621_v28 = vmax.f32 %v3922_v2, %v1557_v6  ;;  %v1558_v22 = vsel %vm1430_vm9, %v850_v0, -inf  ;;  %v1620_v26 = vmax.f32 %v3923_v32, %v1556_v34  ;;  %1128 = vrot.lane.b32.xlu1 %v3500_v50, %s2266_s10  ;;  %v3521_v58 = vpop.f32.mrb[67].mxu1  ;;  %v3537_v3 = vpop.f32.mrb[70].mxu0  ;;  %vm1880_vm14 = vcmask 523264  }
 0x1b3   : > { %v1622_v1 = vmax.f32 %v3924_v23, %v1558_v22  ;;  %v3502_v42 = vmax.f32 %v1651_v21, %v1652_v62  ;;  %v3527_v24 = vpop.f32.mrb[68].mxu1  ;;  %v3543_v35 = vpop.f32.mrb[71].mxu0  ;;  %v3934_v23 = vld [vmem:[#allocation13_spill] sm:$0xff] }
 0x1b4   : > { %v1653_v57 = vmax.f32 %v1619_v25, %v1621_v28  ;;  %v3533_v63 = vpop.f32.mrb[69].mxu1  ;;  %v1785_v43 = vpop.permute.xlu1 %1784 }
 0x1b5   : > { %3925 = vst [vmem:[#allocation26_spill] sm:$0xff] %v3502_v42  ;;  %v1654_v27 = vmax.f32 %v1620_v26, %v1622_v1  ;;  %1126 = vrot.lane.b32.xlu0 %v919_v41, %s2266_s10  ;;  %v3539_v13 = vpop.f32.mrb[70].mxu1  ;;  %v1788_v60 = vpop.permute.xlu0 %1787  ;;  %v1079_v1 = vmul.f32 %v3500_v50, %v3934_v23  ;;  %vm1831_vm13 = vcmp.eq.s32.totalorder %v1785_v43, 1 }
 0x1b6   : > { %1144 = vrot.lane.b32.xlu1 %v3504_v15, %s2266_s10  ;;  %3927 = vst [vmem:[#allocation28_spill] sm:$0xff] %v3539_v13  ;;  %v3545_v30 = vpop.f32.mrb[71].mxu1  ;;  %vm1832_vm6 = vcmp.eq.s32.totalorder %v1788_v60, 1 }
 0x1b7   : > { %v3513_v4 = vmax.f32 %v1653_v57, %v1654_v27  ;;  %3928 = vst [vmem:[#allocation29_spill] sm:$0xff] %v3545_v30  ;;  %v3935_v57 = vld [vmem:[#allocation11_spill] sm:$0xff] }
 0x1b8   : > { %v1791_v61 = vpop.permute.xlu1 %1790  ;;  %v1078_v27 = vmul.f32 %v3935_v57, %v919_v41  ;;  %v3939_v41 = vld [vmem:[#allocation9_spill] sm:$0xff] }
 0x1b9   : > { %3926 = vst [vmem:[#allocation27_spill] sm:$0xff] %v3513_v4  ;;  %1142 = vrot.lane.b32.xlu0 %v3508_v46, %s2266_s10  ;;  %v1794_v31 = vpop.permute.xlu0 %1793  ;;  %vm1833_vm15 = vcmp.eq.s32.totalorder %v1791_v61, 1  ;;  %v1847_v57 = vsel %vm1831_vm13, %v3939_v41, 0.0  ;;  %v1848_v60 = vsel %vm1832_vm6, %v3939_v41, 0.0 }
 0x1ba   : > { %1132 = vrot.lane.b32.xlu1 %v3511_v29, %s2266_s10  ;;  %vm1834_vm1 = vcmp.eq.s32.totalorder %v1794_v31, 1  ;;  %v3626_v61 = vsel %vm1833_vm15, %v3939_v41, 0.0  ;;  %v3940_v31 = vld [vmem:[#allocation12_spill] sm:$0xff] }
 0x1bc   : > { %v3569_v44 = vpop.permute.xlu1 %1796 }
 0x1bd   : > { %1130 = vrot.lane.b32.xlu0 %v3519_v5, %s2266_s10  ;;  %v3571_v45 = vpop.permute.xlu0 %1799  ;;  %vm1835_vm12 = vcmp.eq.s32.totalorder %v3569_v44, 1 }
 0x1be   : > { %1148 = vrot.lane.b32.xlu1 %v3515_v14, %s2266_s10  ;;  %vm1836_vm11 = vcmp.eq.s32.totalorder %v3571_v45, 1 }
 0x1c0   : > { %v3573_v8 = vpop.permute.xlu1 %1802 }
 0x1c1   : > { %1146 = vrot.lane.b32.xlu0 %v3521_v58, %s2266_s10  ;;  %3929 = vst [vmem:[#allocation40_spill] sm:$0xff] %v3573_v8  ;;  %v3575_v18 = vpop.permute.xlu0 %1805 }
 0x1c2   : > { %1136 = vrot.lane.b32.xlu1 %v3525_v16, %s2266_s10  ;;  %vm1838_vm7 = vcmp.eq.s32.totalorder %v3575_v18, 1 }
 0x1c4   : > { %v3577_v19 = vpop.permute.xlu1 %1808 }
 0x1c5   : > { %1134 = vrot.lane.b32.xlu0 %v3531_v51, %s2266_s10  ;;  %v3579_v9 = vpop.permute.xlu0 %1811  ;;  %vm1839_vm0 = vcmp.eq.s32.totalorder %v3577_v19, 1 }
 0x1c6   : > { %1152 = vrot.lane.b32.xlu1 %v3527_v24, %s2266_s10  ;;  %vm1840_vm10 = vcmp.eq.s32.totalorder %v3579_v9, 1 }
 0x1c8   : > { %v3581_v39 = vpop.permute.xlu1 %1814 }
 0x1c9   : > { %1150 = vrot.lane.b32.xlu0 %v3533_v63, %s2266_s10  ;;  %v3583_v54 = vpop.permute.xlu0 %1817  ;;  %vm1841_vm4 = vcmp.eq.s32.totalorder %v3581_v39, 1 }
 0x1ca   : > { %1140 = vrot.lane.b32.xlu1 %v3537_v3, %s2266_s10  ;;  %vm1842_vm5 = vcmp.eq.s32.totalorder %v3583_v54, 1  ;;  %v3949_v54 = vld [vmem:[#allocation17_spill] sm:$0xff] }
 0x1cc   : > { %v3585_v38 = vpop.permute.xlu1 %1820 }
 0x1cd   : > { %1138 = vrot.lane.b32.xlu0 %v3543_v35, %s2266_s10  ;;  %v3587_v21 = vpop.permute.xlu0 %1823  ;;  %vm1843_vm8 = vcmp.eq.s32.totalorder %v3585_v38, 1 }
 0x1ce   : > { %1156 = vrot.lane.b32.xlu1 %v3539_v13, %s2266_s10  ;;  %v3937_v13 = vld [vmem:[#allocation18_spill] sm:$0xff]  ;;  %vm1844_vm3 = vcmp.eq.s32.totalorder %v3587_v21, 1 }
 0x1cf   : > { %v1087_v8 = vmul.f32 %v3504_v15, %v3937_v13 }
 0x1d0   : > { %v3589_v10 = vpop.permute.xlu1 %1826 }
 0x1d1   : > { %1154 = vrot.lane.b32.xlu0 %v3545_v30, %s2266_s10  ;;  %3930 = vst [vmem:[#allocation30_spill] sm:$0xff] %v3589_v10  ;;  %v3591_v40 = vpop.permute.xlu0 %1829  ;;  %v3938_v30 = vld [vmem:[#allocation19_spill] sm:$0xff] }
 0x1d2   : > { %1699 = vrot.lane.b32.xlu1 %v3502_v42, %s2266_s10  ;;  %3931 = vst [vmem:[#allocation31_spill] sm:$0xff] %v3591_v40  ;;  %v1086_v59 = vmul.f32 %v3938_v30, %v3508_v46  ;;  %v3630_v46 = vsel %vm1834_vm1, %v3939_v41, 0.0 }
 0x1d5   : > { %1701 = vrot.lane.b32.xlu0 %v3513_v4, %s2266_s10  ;;  %v3936_v4 = vld [vmem:[#allocation8_spill] sm:$0xff] }
 0x1d6   : > { %v1095_v42 = vsub.f32 %v3936_v4, %v1079_v1  ;;  %v1094_v50 = vsub.f32 %v3936_v4, %v1078_v27  ;;  %v1103_v30 = vsub.f32 %v3936_v4, %v1087_v8  ;;  %v1081_v1 = vmul.f32 %v3511_v29, %v3940_v31 }
 0x1d8   : > { %v1097_v29 = vsub.f32 %v3936_v4, %v1081_v1 }
 0x1de   : > { %v1672_v11 = vpop.permute.xlu1 %1671 }
 0x1df   : > { %v1703_v15 = vmax.f32 %v2943_v56, %v1672_v11 }
 0x1e3   : > { %v1674_v62 = vpop.permute.xlu0 %1673 }
 0x1e9   : > { %v3593_v47 = vpop.permute.xlu1 %1675 }
 0x1ef   : > { %v3595_v25 = vpop.permute.xlu0 %1677 }
 0x1f0   : > { %v1706_v1 = vmax.f32 %v3087_v33, %v3595_v25  ;;  %v3944_v25 = vld [vmem:[#allocation14_spill] sm:$0xff] }
 0x1f4   : > { %v3597_v6 = vpop.permute.xlu1 %1679 }
 0x1fa   : > { %v3599_v0 = vpop.permute.xlu0 %1681 }
 0x1ff   : > { %v3601_v34 = vpop.permute.xlu1 %1683 }
 0x200   : > { %3932 = vst [vmem:[#allocation32_spill] sm:$0xff] %v3601_v34  ;;  %v1704_v34 = vmax.f32 %v2991_v53, %v1674_v62  ;;  %v3941_v62 = vld [vmem:[#allocation10_spill] sm:$0xff] }
 0x201   : > { %v1080_v27 = vmul.f32 %v3941_v62, %v3519_v5  ;;  %v3942_v5 = vld [vmem:[#allocation20_spill] sm:$0xff]  ;;  %v1083_v62 = vmul.f32 %v3525_v16, %v3944_v25 }
 0x206   : > { %v3603_v2 = vpop.permute.xlu0 %1685 }
 0x207   : > { %3933 = vst [vmem:[#allocation33_spill] sm:$0xff] %v3603_v2 }
 0x20b   : > { %v1688_v28 = vpop.permute.xlu1 %1687 }
 0x20c   : > { %v1711_v2 = vmax.f32 %v3323_v37, %v1688_v28  ;;  %v3943_v37 = vld [vmem:[#allocation21_spill] sm:$0xff] }
 0x20d   : > { %v1088_v28 = vmul.f32 %v3943_v37, %v3521_v58  ;;  %v1856_v58 = vsel %vm1840_vm10, %v3939_v41, 0.0 }
 0x20f   : > { %v1104_v9 = vsub.f32 %v3936_v4, %v1088_v28 }
 0x211   : > { %v1690_v22 = vpop.permute.xlu0 %1689 }
 0x212   : > { %v1712_v11 = vmax.f32 %v3371_v36, %v1690_v22  ;;  %v1089_v36 = vmul.f32 %v3515_v14, %v3942_v5  ;;  %v1099_v5 = vsub.f32 %v3936_v4, %v1083_v62  ;;  %v1852_v62 = vsel %vm1836_vm11, %v3939_v41, 0.0 }
 0x214   : > { %v1105_v33 = vsub.f32 %v3936_v4, %v1089_v36  ;;  %v3946_v36 = vld [vmem:[#allocation22_spill] sm:$0xff] }
 0x216   : > { %v3605_v32 = vpop.permute.xlu1 %1691 }
 0x21b   : > { %v3607_v26 = vpop.permute.xlu0 %1693 }
 0x220   : > { %v3612_v40 = vpop.permute.xlu1 %1695 }
 0x223   : > { %v3614_v10 = vpop.permute.xlu0 %1697 }
 0x224   : > { %v1129_v23 = vpop.permute.xlu1 %1128 }
 0x225   : > { %v1175_v49 = vsub.f32 %v1095_v42, %v1129_v23  ;;  %v1102_v42 = vsub.f32 %v3936_v4, %v1086_v59 }
 0x227   : > { %v1127_v43 = vpop.permute.xlu0 %1126  ;;  %v1720_v53 = vadd.f32 %v1704_v34, %v1175_v49 }
 0x228   : > { %v1174_v13 = vsub.f32 %v1094_v50, %v1127_v43  ;;  %v1145_v56 = vpop.permute.xlu1 %1144 }
 0x229   : > { %v1736_v50 = vmax.f32 %v1720_v53, 0.0  ;;  %v1183_v43 = vsub.f32 %v1103_v30, %v1145_v56  ;;  %v1855_v53 = vsel %vm1839_vm0, %v3939_v41, 0.0  ;;  %v3945_v56 = vld [vmem:[#allocation15_spill] sm:$0xff] }
 0x22a   : > { %v1719_v23 = vadd.f32 %v1703_v15, %v1174_v13  ;;  %v1096_v15 = vsub.f32 %v3936_v4, %v1080_v27 }
 0x22b   : > { %v1143_v8 = vpop.permute.xlu0 %1142  ;;  %v1864_v34 = vmax.f32 %v1736_v50, %v1848_v60  ;;  %v1728_v22 = vadd.f32 %v1712_v11, %v1183_v43  ;;  %v1714_v43 = vmax.f32 %v3441_v48, %v3607_v26  ;;  %v1091_v48 = vmul.f32 %v3527_v24, %v3946_v36  ;;  %v3955_v36 = vld [vmem:[#allocation25_spill] sm:$0xff] }
 0x22c   : > { %v1735_v59 = vmax.f32 %v1719_v23, 0.0  ;;  %v1182_v49 = vsub.f32 %v1102_v42, %v1143_v8  ;;  %v1133_v31 = vpop.permute.xlu1 %1132  ;;  %v1708_v24 = vmax.f32 %v3179_v12, %v3599_v0  ;;  %v3948_v12 = vld [vmem:[#allocation16_spill] sm:$0xff] }
 0x22d   : > { %1882 = vst.msk [vmem:[%s3647_s13 + $0x8] sm:$0xff] %vm1880_vm14, %v1864_v34  ;;  %v1744_v14 = vmax.f32 %v1728_v22, 0.0  ;;  %v1177_v60 = vsub.f32 %v1097_v29, %v1133_v31  ;;  %v3947_v22 = vld [vmem:[#allocation23_spill] sm:$0xff]  ;;  %v1085_v0 = vmul.f32 %v3537_v3, %v3948_v12 }
 0x22e   : > { %v1863_v13 = vmax.f32 %v1735_v59, %v1847_v57  ;;  %v1727_v30 = vadd.f32 %v1711_v2, %v1182_v49  ;;  %v1705_v2 = vmax.f32 %v3039_v7, %v3593_v47  ;;  %v1082_v7 = vmul.f32 %v3945_v56, %v3531_v51 }
 0x22f   : > { %v1131_v42 = vpop.permute.xlu0 %1130  ;;  %v1872_v27 = vmax.f32 %v1744_v14, %v1856_v58  ;;  %v1722_v23 = vadd.f32 %v1706_v1, %v1177_v60  ;;  %v1713_v49 = vmax.f32 %v3407_v55, %v3605_v32  ;;  %v1090_v37 = vmul.f32 %v3947_v22, %v3533_v63  ;;  %v3956_v22 = vld [vmem:[#allocation40_spill] sm:$0xff] }
 0x230   : > { %1881 = vst.msk [vmem:[%s3647_s13] sm:$0xff] %vm1880_vm14, %v1863_v13  ;;  %v1743_v19 = vmax.f32 %v1727_v30, 0.0  ;;  %v1176_v57 = vsub.f32 %v1096_v15, %v1131_v42  ;;  %v1149_v50 = vpop.permute.xlu1 %1148  ;;  %v1098_v28 = vsub.f32 %v3936_v4, %v1082_v7  ;;  %v1857_v13 = vsel %vm1841_vm4, %v3939_v41, 0.0 }
 0x231   : > { %1890 = vst.msk [vmem:[%s3647_s13 + $0x48] sm:$0xff] %vm1880_vm14, %v1872_v27  ;;  %v1738_v8 = vmax.f32 %v1722_v23, 0.0  ;;  %v1185_v16 = vsub.f32 %v1105_v33, %v1149_v50  ;;  %v1858_v63 = vsel %vm1842_vm5, %v3939_v41, 0.0  ;;  %v1107_v1 = vsub.f32 %v3936_v4, %v1091_v48 }
 0x232   : > { %v1871_v47 = vmax.f32 %v1743_v19, %v1855_v53  ;;  %v1721_v11 = vadd.f32 %v1705_v2, %v1176_v57  ;;  %v1106_v42 = vsub.f32 %v3936_v4, %v1090_v37  ;;  %v1084_v58 = vmul.f32 %v3949_v54, %v3543_v35  ;;  %v3957_v37 = vld [vmem:[#allocation24_spill] sm:$0xff] }
 0x233   : > { %v1147_v59 = vpop.permute.xlu0 %1146  ;;  %v1866_v26 = vmax.f32 %v1738_v8, %v3630_v46  ;;  %v1730_v34 = vadd.f32 %v1714_v43, %v1185_v16  ;;  %v1716_v57 = vmax.f32 %v3488_v20, %v3614_v10  ;;  %v1715_v35 = vmax.f32 %v3472_v17, %v3612_v40  ;;  %v3950_v17 = vld [vmem:[#allocation33_spill] sm:$0xff]  ;;  %v3951_v40 = vld [vmem:[#allocation39_spill] sm:$0xff]  ;;  %v3952_v8 = vld [vmem:[#allocation32_spill] sm:$0xff] }
 0x234   : > { %1889 = vst.msk [vmem:[%s3647_s13 + $0x40] sm:$0xff] %vm1880_vm14, %v1871_v47  ;;  %v1737_v51 = vmax.f32 %v1721_v11, 0.0  ;;  %v1184_v29 = vsub.f32 %v1104_v9, %v1147_v59  ;;  %v1137_v15 = vpop.permute.xlu1 %1136  ;;  %v1101_v20 = vsub.f32 %v3936_v4, %v1085_v0  ;;  %v1100_v45 = vsub.f32 %v3936_v4, %v1084_v58  ;;  %v3953_v16 = vld [vmem:[#allocation60_spill] sm:$0xff]  ;;  %v3959_v0 = vld [vmem:[#allocation26_spill] sm:$0xff] }
 0x235   : > { %1884 = vst.msk [vmem:[%s3647_s13 + $0x18] sm:$0xff] %vm1880_vm14, %v1866_v26  ;;  %v1746_v46 = vmax.f32 %v1730_v34, 0.0  ;;  %v1179_v30 = vsub.f32 %v1099_v5, %v1137_v15  ;;  %v1710_v47 = vmax.f32 %v3951_v40, %v3950_v17  ;;  %v1860_v43 = vsel %vm1844_vm3, %v3939_v41, 0.0  ;;  %v3954_v5 = vld [vmem:[#allocation29_spill] sm:$0xff]  ;;  %v3961_v58 = vld [vmem:[#allocation30_spill] sm:$0xff] }
 0x236   : > { %v1865_v55 = vmax.f32 %v1737_v51, %v3626_v61  ;;  %v1729_v32 = vadd.f32 %v1713_v49, %v1184_v29  ;;  %v1707_v61 = vmax.f32 %v3131_v52, %v3597_v6  ;;  %v1851_v6 = vsel %vm1835_vm12, %v3939_v41, 0.0 }
 0x237   : > { %v1135_v31 = vpop.permute.xlu0 %1134  ;;  %v1874_v14 = vmax.f32 %v1746_v46, %v1858_v63  ;;  %v1724_v60 = vadd.f32 %v1708_v24, %v1179_v30  ;;  %v1709_v59 = vmax.f32 %v3953_v16, %v3952_v8  ;;  %v1859_v29 = vsel %vm1843_vm8, %v3939_v41, 0.0 }
 0x238   : > { %1883 = vst.msk [vmem:[%s3647_s13 + $0x10] sm:$0xff] %vm1880_vm14, %v1865_v55  ;;  %v1745_v39 = vmax.f32 %v1729_v32, 0.0  ;;  %v1178_v53 = vsub.f32 %v1098_v28, %v1135_v31  ;;  %v1153_v52 = vpop.permute.xlu1 %1152  ;;  %v1092_v48 = vmul.f32 %v3955_v36, %v3954_v5  ;;  %vm1837_vm9 = vcmp.eq.s32.totalorder %v3956_v22, 1  ;;  %v3958_v28 = vld [vmem:[#allocation28_spill] sm:$0xff] }
 0x239   : > { %1892 = vst.msk [vmem:[%s3647_s13 + $0x58] sm:$0xff] %vm1880_vm14, %v1874_v14  ;;  %v1740_v3 = vmax.f32 %v1724_v60, 0.0  ;;  %v1187_v33 = vsub.f32 %v1107_v1, %v1153_v52  ;;  %v1093_v55 = vmul.f32 %v3958_v28, %v3957_v37  ;;  %v1854_v46 = vsel %vm1838_vm7, %v3939_v41, 0.0 }
 0x23a   : > { %v1873_v2 = vmax.f32 %v1745_v39, %v1857_v13  ;;  %v1723_v19 = vadd.f32 %v1707_v61, %v1178_v53  ;;  %v1853_v31 = vsel %vm1837_vm9, %v3939_v41, 0.0  ;;  %v1108_v63 = vsub.f32 %v3936_v4, %v1092_v48 }
 0x23b   : > { %v1151_v25 = vpop.permute.xlu0 %1150  ;;  %v1868_v10 = vmax.f32 %v1740_v3, %v1852_v62  ;;  %v1732_v23 = vadd.f32 %v1716_v57, %v1187_v33  ;;  %v1109_v39 = vsub.f32 %v3936_v4, %v1093_v55  ;;  %vm1845_vm2 = vcmp.eq.s32.totalorder %v3961_v58, 1 }
 0x23c   : > { %1891 = vst.msk [vmem:[%s3647_s13 + $0x50] sm:$0xff] %vm1880_vm14, %v1873_v2  ;;  %v1739_v44 = vmax.f32 %v1723_v19, 0.0  ;;  %v1186_v27 = vsub.f32 %v1106_v42, %v1151_v25  ;;  %v1141_v7 = vpop.permute.xlu1 %1140  ;;  %v3960_v42 = vld [vmem:[#allocation27_spill] sm:$0xff]  ;;  %v1861_v57 = vsel %vm1845_vm2, %v3939_v41, 0.0 }
 0x23d   : > { %1886 = vst.msk [vmem:[%s3647_s13 + $0x28] sm:$0xff] %vm1880_vm14, %v1868_v10  ;;  %v1748_v21 = vmax.f32 %v1732_v23, 0.0  ;;  %v1181_v11 = vsub.f32 %v1101_v20, %v1141_v7  ;;  %v3962_v19 = vld [vmem:[#allocation31_spill] sm:$0xff] }
 0x23e   : > { %v1867_v9 = vmax.f32 %v1739_v44, %v1851_v6  ;;  %v1731_v56 = vadd.f32 %v1715_v35, %v1186_v27  ;;  %vm1846_vm13 = vcmp.eq.s32.totalorder %v3962_v19, 1 }
 0x23f   : > { %v1139_v50 = vpop.permute.xlu0 %1138  ;;  %v1876_v26 = vmax.f32 %v1748_v21, %v1860_v43  ;;  %v1726_v34 = vadd.f32 %v1710_v47, %v1181_v11  ;;  %v1862_v33 = vsel %vm1846_vm13, %v3939_v41, 0.0 }
 0x240   : > { %1885 = vst.msk [vmem:[%s3647_s13 + $0x20] sm:$0xff] %vm1880_vm14, %v1867_v9  ;;  %v1747_v49 = vmax.f32 %v1731_v56, 0.0  ;;  %v1180_v51 = vsub.f32 %v1100_v45, %v1139_v50  ;;  %v1157_v13 = vpop.permute.xlu1 %1156 }
 0x241   : > { %1894 = vst.msk [vmem:[%s3647_s13 + $0x68] sm:$0xff] %vm1880_vm14, %v1876_v26  ;;  %v1742_v24 = vmax.f32 %v1726_v34, 0.0  ;;  %v1189_v60 = vsub.f32 %v1109_v39, %v1157_v13 }
 0x242   : > { %v1875_v32 = vmax.f32 %v1747_v49, %v1859_v29  ;;  %v1725_v15 = vadd.f32 %v1709_v59, %v1180_v51 }
 0x243   : > { %v1155_v38 = vpop.permute.xlu0 %1154  ;;  %v1870_v61 = vmax.f32 %v1742_v24, %v1854_v46 }
 0x244   : > { %1893 = vst.msk [vmem:[%s3647_s13 + $0x60] sm:$0xff] %vm1880_vm14, %v1875_v32  ;;  %v1741_v30 = vmax.f32 %v1725_v15, 0.0  ;;  %v1700_v1 = vpop.permute.xlu1 %1699  ;;  %v1188_v12 = vsub.f32 %v1108_v63, %v1155_v38 }
 0x245   : > { %1888 = vst.msk [vmem:[%s3647_s13 + $0x38] sm:$0xff] %vm1880_vm14, %v1870_v61  ;;  %v1717_v14 = vmax.f32 %v3959_v0, %v1700_v1 }
 0x246   : > { %v1869_v53 = vmax.f32 %v1741_v30, %v1853_v31 }
 0x247   : > { %v1702_v18 = vpop.permute.xlu0 %1701  ;;  %v1733_v2 = vadd.f32 %v1717_v14, %v1188_v12 }
 0x248   : > { %1887 = vst.msk [vmem:[%s3647_s13 + $0x30] sm:$0xff] %vm1880_vm14, %v1869_v53  ;;  %v1718_v54 = vmax.f32 %v3960_v42, %v1702_v18 }
 0x249   : > { %v1749_v6 = vmax.f32 %v1733_v2, 0.0 }
 0x24a   : > { %v1734_v52 = vadd.f32 %v1718_v54, %v1189_v60  ;;  %45 = sbr.rel (!%p43_p2) target bundleno = 42 (0x2a), region = 45 }
 0x24b   : > { %v1877_v25 = vmax.f32 %v1749_v6, %v1861_v57 }
 0x24c   : > { %v1750_v3 = vmax.f32 %v1734_v52, 0.0 }
 0x24d   : > { %1895 = vst.msk [vmem:[%s3647_s13 + $0x70] sm:$0xff] %vm1880_vm14, %v1877_v25 }
 0x24e   : > { %v1878_v62 = vmax.f32 %v1750_v3, %v1862_v33 }
 0x250   : > { %1896 = vst.msk [vmem:[%s3647_s13 + $0x78] sm:$0xff] %vm1880_vm14, %v1878_v62 }
 0x251   :  { %1901 = vsyncpa [#allocation3], 1 }
 0x252   :  { %1902 = vsyncpa [#allocation5], 1 }

</bundles_post_ra>
